<compile_context>
chip_gen: v7x
topology: tpu7x:2x2x1
jax: 0.10.0
libtpu: 0.0.40
codegen_flags: <defaults>
</compile_context>

<pallas_src>
import functools
import math

import jax
import jax.numpy as jnp
from jax.experimental import pallas as pl
from jax.experimental.pallas import tpu as pltpu


_SQRT_HALF = 1.0 / math.sqrt(2.0)
_TANH_C = math.sqrt(2.0 / math.pi)


def _gelu(x, *, tanh_approx=False):
    # PyTorch nn.GELU() default is the exact (erf) GELU; the tanh form routes
    # the transcendental to the EUP slot (otherwise idle in this kernel).
    if tanh_approx:
        return 0.5 * x * (1.0 + jnp.tanh(_TANH_C * (x + 0.044715 * x * x * x)))
    return 0.5 * x * (1.0 + jax.lax.erf(x * _SQRT_HALF))


def lncloc_kernel(sw_ref, sf_ref, w1sf_ref, wg_ref, wb_ref, b23_ref, out_ref, *,
                  gelu_tanh):
    # --- L2 normalize in f32 (sw arrives bf16). rsqrt -> EUP slot; eps on the
    #     squared norm == clamping the norm at 1e-12 (F.normalize semantics).
    sw = sw_ref[...].astype(jnp.float32)
    sumsq = jnp.sum(sw * sw, axis=1, keepdims=True)
    sw_n = sw * jax.lax.rsqrt(jnp.maximum(sumsq, 1e-24))

    # --- fused layer 1 (encoder folded in). Split matmul avoids any concat:
    #     concat(sf, g) @ W1 == sf @ W1[:200] + sw_n @ (w_enc @ W1[200:]).
    b1 = wb_ref[0:1, :]                                   # folded bias row
    h1 = (jnp.dot(sf_ref[...], w1sf_ref[...], preferred_element_type=jnp.float32)
          + jnp.dot(sw_n.astype(wg_ref.dtype), wg_ref[...],
                    preferred_element_type=jnp.float32)
          + b1)
    h1 = _gelu(h1, tanh_approx=gelu_tanh)

    # --- folded Linear(H->H/2) @ Linear(H/2->1): one (1,H) x (H, block_b) MXU
    #     matmul lands the batch directly in lanes -> lane-dense (1, block_b)
    #     store (no wide broadcast slab, ~4 B of writeback per row).
    w23 = wb_ref[1:2, :]
    out_row = jnp.dot(w23, h1.T, preferred_element_type=jnp.float32)
    out_ref[...] = (out_row + b23_ref[0, 0]).astype(out_ref.dtype)


def _pick_block_b(batch):
    # Single full-dim tile for small batches (always layout-legal); otherwise an
    # even number (>=2) of 128-row-multiple tiles so ('parallel',) splits evenly
    # across v7x's two TensorCores, capped at 1024 rows (per-step overhead
    # amortized; activations are only ~2.3 KB/row double-buffered).
    if batch < 256:
        return batch
    return min(1024, max(128, (batch // 2) // 128 * 128))


def lncloc_forward(sw, sf, params, *, block_b=None, use_bf16=True,
                   gelu_tanh=True):
    B, Dsw = sw.shape
    Sf = sf.shape[1]
    H = params["w1"].shape[1]

    # ---- host-side algebraic folding (exact up to fp reassociation) ----
    w1_sf = params["w1"][:Sf, :]                              # (Sf, H)
    w1_g = params["w1"][Sf:, :]                               # (E,  H)
    w_g_fold = params["w_enc"] @ w1_g                         # (Dsw, H)
    b1_fold = params["b1"] + params["b_enc"] @ w1_g           # (1, H)
    w23 = (params["w2"] @ params["w3"]).T                     # (1, H)
    b23 = params["b2"] @ params["w3"] + params["b3"]          # (1, 1)

    mm_dtype = jnp.bfloat16 if use_bf16 else jnp.float32
    sw_in = sw.astype(mm_dtype)          # bf16 HBM read; upcast in-kernel
    sf_in = sf.astype(mm_dtype)
    w1_sf = w1_sf.astype(mm_dtype)
    w_g_fold = w_g_fold.astype(mm_dtype)
    # Packed (2, H) f32 tile: row 0 = folded b1, row 1 = folded w23
    # (one sublane-padded weight tile instead of two).
    wb = jnp.concatenate([b1_fold, w23], axis=0).astype(jnp.float32)
    b23 = b23.astype(jnp.float32)

    if block_b is None:
        block_b = _pick_block_b(B)
    block_b = max(1, min(block_b, B))
    nb = pl.cdiv(B, block_b)

    kern = functools.partial(lncloc_kernel, gelu_tanh=gelu_tanh)
    out_shape = jax.ShapeDtypeStruct((1, B), jnp.float32)

    def build_and_run(single_buffer_weights):
        # Grid-invariant weights: request single-buffering to drop their
        # double-buffer (VMEM headroom for v7x's 64 MiB at production H).
        w_kwargs = ({"pipeline_mode": pl.Buffered(buffer_count=1)}
                    if single_buffer_weights else {})
        wfull = lambda i: (0, 0)
        grid_spec = pltpu.PrefetchScalarGridSpec(
            num_scalar_prefetch=0,
            grid=(nb,),
            in_specs=[
                pl.BlockSpec((block_b, Dsw), lambda i: (i, 0)),      # sw  (bf16)
                pl.BlockSpec((block_b, Sf), lambda i: (i, 0)),       # sf  (bf16)
                pl.BlockSpec((Sf, H), wfull, **w_kwargs),            # w1[:200]
                pl.BlockSpec((Dsw, H), wfull, **w_kwargs),           # w_enc @ w1[200:]
                pl.BlockSpec((2, H), wfull, **w_kwargs),             # [b1_fold; w23]
                pl.BlockSpec(memory_space=pltpu.MemorySpace.SMEM),   # b23 scalar
            ],
            out_specs=pl.BlockSpec((1, block_b), lambda i: (0, i)),  # batch in lanes
        )
        return pl.pallas_call(
            kern,
            out_shape=out_shape,
            grid_spec=grid_spec,
            compiler_params=pltpu.CompilerParams(
                dimension_semantics=("parallel",)),
        )(sw_in, sf_in, w1_sf, w_g_fold, wb, b23)

    try:
        out_row = build_and_run(single_buffer_weights=True)
    except Exception:
        # pl.Buffered / pipeline_mode not supported by this jax+libtpu combo:
        # fall back to the known-good default double-buffered weight specs.
        out_row = build_and_run(single_buffer_weights=False)

    return out_row.reshape(B, 1)


def _reference_forward(sw, sf, params):
    """Pure-JAX f32 reference with the original (unfused) module structure."""
    norm = jnp.sqrt(jnp.sum(sw * sw, axis=1, keepdims=True))
    sw_n = sw / jnp.maximum(norm, 1e-12)
    g_repr = sw_n @ params["w_enc"] + params["b_enc"]
    x = jnp.concatenate([sf, g_repr], axis=1)
    h1 = _gelu(x @ params["w1"] + params["b1"])           # exact erf GELU
    h2 = h1 @ params["w2"] + params["b2"]
    return h2 @ params["w3"] + params["b3"]


def make_params(key, *, dsw, sf_dim, embed_dim, hidden_dim):
    ks = jax.random.split(key, 4)
    scale = 0.02
    return {
        "w_enc": scale * jax.random.normal(ks[0], (dsw, embed_dim), jnp.float32),
        "b_enc": jnp.zeros((1, embed_dim), jnp.float32),
        "w1": scale * jax.random.normal(ks[1], (sf_dim + embed_dim, hidden_dim),
                                        jnp.float32),
        "b1": jnp.zeros((1, hidden_dim), jnp.float32),
        "w2": scale * jax.random.normal(ks[2], (hidden_dim, hidden_dim // 2),
                                        jnp.float32),
        "b2": jnp.zeros((1, hidden_dim // 2), jnp.float32),
        "w3": scale * jax.random.normal(ks[3], (hidden_dim // 2, 1), jnp.float32),
        "b3": jnp.zeros((1, 1), jnp.float32),
    }


if __name__ == "__main__":
    # Small shapes consistent with the module: sf is hard-coded 200-dim in LncLoc.
    B = 256        # batch: auto block_b=128 -> 2 "parallel" steps (both v7x TCs)
    DSW = 64       # shapelet-weight feature dim fed to the graph encoder
    SF_DIM = 200   # fixed by `embed_dim + 200` in the module
    EMBED = 32     # embed_dim (small stand-in for 256)
    HIDDEN = 32    # hidden_dim (small stand-in for 256)

    key = jax.random.PRNGKey(0)
    k_sw, k_sf, k_p = jax.random.split(key, 3)
    sw = jax.random.normal(k_sw, (B, DSW), jnp.float32)
    sf = jax.random.normal(k_sf, (B, SF_DIM), jnp.float32)
    params = make_params(k_p, dsw=DSW, sf_dim=SF_DIM,
                         embed_dim=EMBED, hidden_dim=HIDDEN)

    out = lncloc_forward(sw, sf, params)
    out = jax.block_until_ready(out)

    ref = _reference_forward(sw, sf, params)
    assert out.shape == (B, 1), out.shape
    # bf16 MXU inputs, tanh-GELU, and host-side weight folding reassociate /
    # approximate fp sums -> loosened tolerance.
    assert jnp.allclose(out, ref, atol=5e-3, rtol=5e-2), (out[:4], ref[:4])

    print("KERNEL_OK")
</pallas_src>

<mosaic_0001>
module attributes {stable_mosaic.version = 11 : i64} {
  func.func @lncloc_kernel(%arg0: i32, %arg1: memref<128x64xbf16, #tpu.memory_space<vmem>>, %arg2: memref<128x200xbf16, #tpu.memory_space<vmem>>, %arg3: memref<200x32xbf16, #tpu.memory_space<vmem>>, %arg4: memref<64x32xbf16, #tpu.memory_space<vmem>>, %arg5: memref<2x32xf32, #tpu.memory_space<vmem>>, %arg6: memref<1x1xf32, #tpu.memory_space<smem>>, %arg7: memref<1x128xf32, #tpu.memory_space<vmem>>) attributes {dimension_semantics = [#tpu.dimension_semantics<parallel>], iteration_bounds = array<i64: 2>, scalar_prefetch = 0 : i64, scratch_operands = 0 : i64, tpu.core_type = #tpu.core_type<tc>, window_params = [{transform_indices = @transform_0, window_bounds = array<i64: 128, 64>}, {transform_indices = @transform_1, window_bounds = array<i64: 128, 200>}, {pipeline_mode = #tpu.pipeline_mode<synchronous>, transform_indices = @transform_2, window_bounds = array<i64: 200, 32>}, {pipeline_mode = #tpu.pipeline_mode<synchronous>, transform_indices = @transform_3, window_bounds = array<i64: 64, 32>}, {pipeline_mode = #tpu.pipeline_mode<synchronous>, transform_indices = @transform_4, window_bounds = array<i64: 2, 32>}, {transform_indices = @transform_5, window_bounds = array<i64: 1, 1>}, {transform_indices = @transform_6, window_bounds = array<i64: 1, 128>}]} {
    %c0 = arith.constant 0 : index
    %c0_0 = arith.constant 0 : index
    %0 = vector.load %arg1[%c0, %c0_0] : memref<128x64xbf16, #tpu.memory_space<vmem>>, vector<128x64xbf16>
    %1 = arith.extf %0 : vector<128x64xbf16> to vector<128x64xf32>
    %2 = arith.mulf %1, %1 : vector<128x64xf32>
    %cst = arith.constant dense<0.000000e+00> : vector<128xf32>
    %3 = vector.multi_reduction <add>, %2, %cst [1] : vector<128x64xf32> to vector<128xf32>
    %4 = vector.shape_cast %3 : vector<128xf32> to vector<128x1xf32>
    %cst_1 = arith.constant 1.000000e-24 : f32
    %5 = vector.broadcast %cst_1 : f32 to vector<128x1xf32>
    %6 = arith.maximumf %4, %5 : vector<128x1xf32>
    %7 = math.rsqrt %6 : vector<128x1xf32>
    %8 = vector.broadcast %7 : vector<128x1xf32> to vector<128x64xf32>
    %9 = arith.mulf %1, %8 : vector<128x64xf32>
    %c0_2 = arith.constant 0 : index
    %c0_3 = arith.constant 0 : index
    %10 = vector.load %arg5[%c0_2, %c0_3] : memref<2x32xf32, #tpu.memory_space<vmem>>, vector<1x32xf32>
    %c0_4 = arith.constant 0 : index
    %c0_5 = arith.constant 0 : index
    %11 = vector.load %arg2[%c0_4, %c0_5] : memref<128x200xbf16, #tpu.memory_space<vmem>>, vector<128x200xbf16>
    %c0_6 = arith.constant 0 : index
    %c0_7 = arith.constant 0 : index
    %12 = vector.load %arg3[%c0_6, %c0_7] : memref<200x32xbf16, #tpu.memory_space<vmem>>, vector<200x32xbf16>
    %cst_8 = arith.constant dense<0.000000e+00> : vector<128x32xf32>
    %13 = tpu.matmul %11, %12, %cst_8 {dimension_numbers = #tpu.dot_dimension_numbers<[1], [0], [0], [1], [0, 0, 1, 1], [], []>} : vector<128x200xbf16>, vector<200x32xbf16>, vector<128x32xf32> -> vector<128x32xf32>
    %14 = arith.truncf %9 : vector<128x64xf32> to vector<128x64xbf16>
    %c0_9 = arith.constant 0 : index
    %c0_10 = arith.constant 0 : index
    %15 = vector.load %arg4[%c0_9, %c0_10] : memref<64x32xbf16, #tpu.memory_space<vmem>>, vector<64x32xbf16>
    %cst_11 = arith.constant dense<0.000000e+00> : vector<128x32xf32>
    %16 = tpu.matmul %14, %15, %cst_11 {dimension_numbers = #tpu.dot_dimension_numbers<[1], [0], [0], [1], [0, 0, 1, 1], [], []>} : vector<128x64xbf16>, vector<64x32xbf16>, vector<128x32xf32> -> vector<128x32xf32>
    %17 = arith.addf %13, %16 : vector<128x32xf32>
    %18 = vector.broadcast %10 : vector<1x32xf32> to vector<128x32xf32>
    %19 = arith.addf %17, %18 : vector<128x32xf32>
    %cst_12 = arith.constant 5.000000e-01 : f32
    %20 = vector.broadcast %cst_12 : f32 to vector<128x32xf32>
    %21 = arith.mulf %20, %19 : vector<128x32xf32>
    %cst_13 = arith.constant 4.471500e-02 : f32
    %22 = vector.broadcast %cst_13 : f32 to vector<128x32xf32>
    %23 = arith.mulf %22, %19 : vector<128x32xf32>
    %24 = arith.mulf %23, %19 : vector<128x32xf32>
    %25 = arith.mulf %24, %19 : vector<128x32xf32>
    %26 = arith.addf %19, %25 : vector<128x32xf32>
    %cst_14 = arith.constant 0.797884583 : f32
    %27 = vector.broadcast %cst_14 : f32 to vector<128x32xf32>
    %28 = arith.mulf %27, %26 : vector<128x32xf32>
    %29 = math.tanh %28 : vector<128x32xf32>
    %cst_15 = arith.constant 1.000000e+00 : f32
    %30 = vector.broadcast %cst_15 : f32 to vector<128x32xf32>
    %31 = arith.addf %30, %29 : vector<128x32xf32>
    %32 = arith.mulf %21, %31 : vector<128x32xf32>
    %c1 = arith.constant 1 : index
    %c0_16 = arith.constant 0 : index
    %33 = vector.load %arg5[%c1, %c0_16] : memref<2x32xf32, #tpu.memory_space<vmem>>, vector<1x32xf32>
    %34 = tpu.transpose %32, [1, 0] : vector<128x32xf32> -> vector<32x128xf32>
    %cst_17 = arith.constant dense<0.000000e+00> : vector<1x128xf32>
    %35 = tpu.matmul %33, %34, %cst_17 {dimension_numbers = #tpu.dot_dimension_numbers<[1], [0], [0], [1], [0, 0, 1, 1], [], []>} : vector<1x32xf32>, vector<32x128xf32>, vector<1x128xf32> -> vector<1x128xf32>
    %c0_18 = arith.constant 0 : index
    %c0_19 = arith.constant 0 : index
    %36 = memref.load %arg6[%c0_18, %c0_19] : memref<1x1xf32, #tpu.memory_space<smem>>
    %37 = vector.broadcast %36 : f32 to vector<1x128xf32>
    %38 = arith.addf %35, %37 : vector<1x128xf32>
    %c0_20 = arith.constant 0 : index
    %c0_21 = arith.constant 0 : index
    %39 = vector.load %arg7[%c0_20, %c0_21] : memref<1x128xf32, #tpu.memory_space<vmem>>, vector<1x128xf32>
    tpu.vector_store %arg7[%c0_20, %c0_21], %38 {strides = array<i32>} : memref<1x128xf32, #tpu.memory_space<vmem>>, vector<1x128xf32>,
    return
  }
  func.func @transform_0(%arg0: i32) -> (i32, i32) {
    %c0_i32 = arith.constant 0 : i32
    %c0_i32_0 = arith.constant 0 : i32
    return %arg0, %c0_i32 : i32, i32
  }
  func.func @transform_1(%arg0: i32) -> (i32, i32) {
    %c0_i32 = arith.constant 0 : i32
    %c0_i32_0 = arith.constant 0 : i32
    return %arg0, %c0_i32 : i32, i32
  }
  func.func @transform_2(%arg0: i32) -> (i32, i32) {
    %c0_i32 = arith.constant 0 : i32
    %c0_i32_0 = arith.constant 0 : i32
    %c0_i32_1 = arith.constant 0 : i32
    return %c0_i32, %c0_i32_0 : i32, i32
  }
  func.func @transform_3(%arg0: i32) -> (i32, i32) {
    %c0_i32 = arith.constant 0 : i32
    %c0_i32_0 = arith.constant 0 : i32
    %c0_i32_1 = arith.constant 0 : i32
    return %c0_i32, %c0_i32_0 : i32, i32
  }
  func.func @transform_4(%arg0: i32) -> (i32, i32) {
    %c0_i32 = arith.constant 0 : i32
    %c0_i32_0 = arith.constant 0 : i32
    %c0_i32_1 = arith.constant 0 : i32
    return %c0_i32, %c0_i32_0 : i32, i32
  }
  func.func @transform_5(%arg0: i32) -> (i32, i32) {
    %c0_i32 = arith.constant 0 : i32
    %c0_i32_0 = arith.constant 0 : i32
    %c0_i32_1 = arith.constant 0 : i32
    return %c0_i32, %c0_i32_0 : i32, i32
  }
  func.func @transform_6(%arg0: i32) -> (i32, i32) {
    %c0_i32 = arith.constant 0 : i32
    %c0_i32_0 = arith.constant 0 : i32
    return %c0_i32, %arg0 : i32, i32
  }
}

module attributes {stable_mosaic.version = 11 : i64} {
  func.func @lncloc_kernel(%arg0: i32, %arg1: memref<128x64xbf16, #tpu.memory_space<vmem>>, %arg2: memref<128x200xbf16, #tpu.memory_space<vmem>>, %arg3: memref<200x32xbf16, #tpu.memory_space<vmem>>, %arg4: memref<64x32xbf16, #tpu.memory_space<vmem>>, %arg5: memref<2x32xf32, #tpu.memory_space<vmem>>, %arg6: memref<1x1xf32, #tpu.memory_space<smem>>, %arg7: memref<1x128xf32, #tpu.memory_space<vmem>>) attributes {dimension_semantics = [#tpu.dimension_semantics<parallel>], iteration_bounds = array<i64: 2>, scalar_prefetch = 0 : i64, scratch_operands = 0 : i64, tpu.core_type = #tpu.core_type<tc>, window_params = [{transform_indices = @transform_0, window_bounds = array<i64: 128, 64>}, {transform_indices = @transform_1, window_bounds = array<i64: 128, 200>}, {pipeline_mode = #tpu.pipeline_mode<synchronous>, transform_indices = @transform_2, window_bounds = array<i64: 200, 32>}, {pipeline_mode = #tpu.pipeline_mode<synchronous>, transform_indices = @transform_3, window_bounds = array<i64: 64, 32>}, {pipeline_mode = #tpu.pipeline_mode<synchronous>, transform_indices = @transform_4, window_bounds = array<i64: 2, 32>}, {transform_indices = @transform_5, window_bounds = array<i64: 1, 1>}, {transform_indices = @transform_6, window_bounds = array<i64: 1, 128>}]} {
    %c0 = arith.constant 0 : index
    %c0_0 = arith.constant 0 : index
    %0 = vector.load %arg1[%c0, %c0_0] : memref<128x64xbf16, #tpu.memory_space<vmem>>, vector<128x64xbf16>
    %1 = arith.extf %0 : vector<128x64xbf16> to vector<128x64xf32>
    %2 = arith.mulf %1, %1 : vector<128x64xf32>
    %cst = arith.constant dense<0.000000e+00> : vector<128xf32>
    %3 = vector.multi_reduction <add>, %2, %cst [1] : vector<128x64xf32> to vector<128xf32>
    %4 = vector.shape_cast %3 : vector<128xf32> to vector<128x1xf32>
    %cst_1 = arith.constant 1.000000e-24 : f32
    %5 = vector.broadcast %cst_1 : f32 to vector<128x1xf32>
    %6 = arith.maximumf %4, %5 : vector<128x1xf32>
    %7 = math.rsqrt %6 : vector<128x1xf32>
    %8 = vector.broadcast %7 : vector<128x1xf32> to vector<128x64xf32>
    %9 = arith.mulf %1, %8 : vector<128x64xf32>
    %c0_2 = arith.constant 0 : index
    %c0_3 = arith.constant 0 : index
    %10 = vector.load %arg5[%c0_2, %c0_3] : memref<2x32xf32, #tpu.memory_space<vmem>>, vector<1x32xf32>
    %c0_4 = arith.constant 0 : index
    %c0_5 = arith.constant 0 : index
    %11 = vector.load %arg2[%c0_4, %c0_5] : memref<128x200xbf16, #tpu.memory_space<vmem>>, vector<128x200xbf16>
    %c0_6 = arith.constant 0 : index
    %c0_7 = arith.constant 0 : index
    %12 = vector.load %arg3[%c0_6, %c0_7] : memref<200x32xbf16, #tpu.memory_space<vmem>>, vector<200x32xbf16>
    %cst_8 = arith.constant dense<0.000000e+00> : vector<128x32xf32>
    %13 = tpu.matmul %11, %12, %cst_8 {dimension_numbers = #tpu.dot_dimension_numbers<[1], [0], [0], [1], [0, 0, 1, 1], [], []>} : vector<128x200xbf16>, vector<200x32xbf16>, vector<128x32xf32> -> vector<128x32xf32>
    %14 = arith.truncf %9 : vector<128x64xf32> to vector<128x64xbf16>
    %c0_9 = arith.constant 0 : index
    %c0_10 = arith.constant 0 : index
    %15 = vector.load %arg4[%c0_9, %c0_10] : memref<64x32xbf16, #tpu.memory_space<vmem>>, vector<64x32xbf16>
    %cst_11 = arith.constant dense<0.000000e+00> : vector<128x32xf32>
    %16 = tpu.matmul %14, %15, %cst_11 {dimension_numbers = #tpu.dot_dimension_numbers<[1], [0], [0], [1], [0, 0, 1, 1], [], []>} : vector<128x64xbf16>, vector<64x32xbf16>, vector<128x32xf32> -> vector<128x32xf32>
    %17 = arith.addf %13, %16 : vector<128x32xf32>
    %18 = vector.broadcast %10 : vector<1x32xf32> to vector<128x32xf32>
    %19 = arith.addf %17, %18 : vector<128x32xf32>
    %cst_12 = arith.constant 5.000000e-01 : f32
    %20 = vector.broadcast %cst_12 : f32 to vector<128x32xf32>
    %21 = arith.mulf %20, %19 : vector<128x32xf32>
    %cst_13 = arith.constant 4.471500e-02 : f32
    %22 = vector.broadcast %cst_13 : f32 to vector<128x32xf32>
    %23 = arith.mulf %22, %19 : vector<128x32xf32>
    %24 = arith.mulf %23, %19 : vector<128x32xf32>
    %25 = arith.mulf %24, %19 : vector<128x32xf32>
    %26 = arith.addf %19, %25 : vector<128x32xf32>
    %cst_14 = arith.constant 0.797884583 : f32
    %27 = vector.broadcast %cst_14 : f32 to vector<128x32xf32>
    %28 = arith.mulf %27, %26 : vector<128x32xf32>
    %29 = math.tanh %28 : vector<128x32xf32>
    %cst_15 = arith.constant 1.000000e+00 : f32
    %30 = vector.broadcast %cst_15 : f32 to vector<128x32xf32>
    %31 = arith.addf %30, %29 : vector<128x32xf32>
    %32 = arith.mulf %21, %31 : vector<128x32xf32>
    %c1 = arith.constant 1 : index
    %c0_16 = arith.constant 0 : index
    %33 = vector.load %arg5[%c1, %c0_16] : memref<2x32xf32, #tpu.memory_space<vmem>>, vector<1x32xf32>
    %34 = tpu.transpose %32, [1, 0] : vector<128x32xf32> -> vector<32x128xf32>
    %cst_17 = arith.constant dense<0.000000e+00> : vector<1x128xf32>
    %35 = tpu.matmul %33, %34, %cst_17 {dimension_numbers = #tpu.dot_dimension_numbers<[1], [0], [0], [1], [0, 0, 1, 1], [], []>} : vector<1x32xf32>, vector<32x128xf32>, vector<1x128xf32> -> vector<1x128xf32>
    %c0_18 = arith.constant 0 : index
    %c0_19 = arith.constant 0 : index
    %36 = memref.load %arg6[%c0_18, %c0_19] : memref<1x1xf32, #tpu.memory_space<smem>>
    %37 = vector.broadcast %36 : f32 to vector<1x128xf32>
    %38 = arith.addf %35, %37 : vector<1x128xf32>
    %c0_20 = arith.constant 0 : index
    %c0_21 = arith.constant 0 : index
    %39 = vector.load %arg7[%c0_20, %c0_21] : memref<1x128xf32, #tpu.memory_space<vmem>>, vector<1x128xf32>
    tpu.vector_store %arg7[%c0_20, %c0_21], %38 {strides = array<i32>} : memref<1x128xf32, #tpu.memory_space<vmem>>, vector<1x128xf32>,
    return
  }
  func.func @transform_0(%arg0: i32) -> (i32, i32) {
    %c0_i32 = arith.constant 0 : i32
    %c0_i32_0 = arith.constant 0 : i32
    return %arg0, %c0_i32 : i32, i32
  }
  func.func @transform_1(%arg0: i32) -> (i32, i32) {
    %c0_i32 = arith.constant 0 : i32
    %c0_i32_0 = arith.constant 0 : i32
    return %arg0, %c0_i32 : i32, i32
  }
  func.func @transform_2(%arg0: i32) -> (i32, i32) {
    %c0_i32 = arith.constant 0 : i32
    %c0_i32_0 = arith.constant 0 : i32
    %c0_i32_1 = arith.constant 0 : i32
    return %c0_i32, %c0_i32_0 : i32, i32
  }
  func.func @transform_3(%arg0: i32) -> (i32, i32) {
    %c0_i32 = arith.constant 0 : i32
    %c0_i32_0 = arith.constant 0 : i32
    %c0_i32_1 = arith.constant 0 : i32
    return %c0_i32, %c0_i32_0 : i32, i32
  }
  func.func @transform_4(%arg0: i32) -> (i32, i32) {
    %c0_i32 = arith.constant 0 : i32
    %c0_i32_0 = arith.constant 0 : i32
    %c0_i32_1 = arith.constant 0 : i32
    return %c0_i32, %c0_i32_0 : i32, i32
  }
  func.func @transform_5(%arg0: i32) -> (i32, i32) {
    %c0_i32 = arith.constant 0 : i32
    %c0_i32_0 = arith.constant 0 : i32
    %c0_i32_1 = arith.constant 0 : i32
    return %c0_i32, %c0_i32_0 : i32, i32
  }
  func.func @transform_6(%arg0: i32) -> (i32, i32) {
    %c0_i32 = arith.constant 0 : i32
    %c0_i32_0 = arith.constant 0 : i32
    return %c0_i32, %arg0 : i32, i32
  }
}

</mosaic_0001>

<bundles_post_ra>
// kernel: tpu_custom_call.1
= control target key start
LH: loop header
LB: loop body
LE: loop exit
PB: predicated region body
PF: predicated region fallthrough
CT: control target
= control target key end

     0   :  { %s2268_s0 = inlined_call_operand.vmem [shape: bf16[256,64], index: 0, kind: input, shape index: {}]   ;;  %s2269_s1 = inlined_call_operand.vmem [shape: bf16[256,200], index: 1, kind: input, shape index: {}]   ;;  %s2270_s2 = inlined_call_operand.vmem [shape: bf16[200,32], index: 2, kind: input, shape index: {}]   ;;  %s2271_s3 = inlined_call_operand.vmem [shape: bf16[64,32], index: 3, kind: input, shape index: {}]   ;;  %s2272_s4 = inlined_call_operand.vmem [shape: f32[2,32], index: 4, kind: input, shape index: {}]   ;;  %s2273_s5 = inlined_call_operand.<no memory space> [shape: f32[1,1], index: 5, kind: input, shape index: {}]   ;;  %s2274_s6 = inlined_call_operand.hbm [shape: f32[1,256], index: 6, kind: output, shape index: {}]  }
   0x1   :  { %11 = sst [smem:[#allocation2]] %s2273_s5 }
   0x2   :  { %12 = vsyncpa [#allocation4], 0 }
   0x3   :  { %14 = vsyncpa [#allocation4 + $0x1], 0  ;;  %s1763_s23 = smov 0   ;;  %s1765_s24 = smov 0  }
   0x4   :  { %s1767_s25 = smov 0   ;;  %s1769_s26 = smov 0  }
   0x5 LB: > { %s1268_s5 = sadd.s32 4294967295, %s1718_s26   ;;  %s1269_s27 = sadd.s32 4294967294, %s1718_s26   ;;  %s1718_s26 = sphi %s1769_s26, %s2282_s26   ;;  %s1714_s25 = sphi %s1767_s25, %s2281_s25   ;;  %s1710_s24 = sphi %s1765_s24, %s2280_s24   ;;  %s1706_s23 = sphi %s1763_s23, %s2279_s23  }
   0x6   : > { %s1786_s28 = sadd.s32 1, %s1718_s26   ;;  %s163_s29 = sadd.s32 1, %s1714_s25 }
   0x7   : > { %s160_s30 = ssub.s32 %s1718_s26, %s1786_s28  ;;  %p173_p0 = scmp.ne.s32.totalorder %s1714_s25, %s1710_s24 }
   0x8   : > { %p161_p1 = scmp.eq.s32.totalorder %s160_s30, 0  ;;  %p174_p2 = scmp.eq.s32.totalorder %s1268_s5, 1 }
   0x9   : > { %p179_p3 = scmp.ne.s32.totalorder %s1710_s24, %s1706_s23  ;;  %p180_p4 = scmp.eq.s32.totalorder %s1269_s27, 1 }
   0xa   : > { %s1796_s7 = scalar_select %p161_p1, %s1714_s25, %s163_s29  }
   0xb   : > { %p1798_p5 = por %p174_p2, %p173_p0  ;;  %p1802_p6 = por %p180_p4, %p179_p3 }
   0xc   : > { %p1272_p7 = scmp.ge.s32.totalorder %s1718_s26, 1  ;;  %p229_p8 = scmp.lt.s32.totalorder %s1718_s26, 3 }
   0xe   : > { %p230_p9 = pnand %p1272_p7, %p229_p8 }
   0xf   : > { %s1808_s10 = sshll.u32 (!%p230_p9), %s1268_s5, 4  ;;  %v1551_v0 = vld [vmem:[%s2270_s2] sm:$0xff] (!%p230_p9)   ;;  %v1720_v1 = vmov (!%p230_p9), 0   ;;  %v1552_v2 = vld [vmem:[%s2270_s2 + $0x8] sm:$0xff] (!%p230_p9)   ;;  %v1553_v3 = vld [vmem:[%s2270_s2 + $0x10] sm:$0xff] (!%p230_p9)   ;;  %vm326_vm0 = vcmask (!%p230_p9), 523264  }
  0x10   : > { %233 = sbr.rel (%p230_p9) target bundleno = 742 (0x2e6), region = 44  ;;  %p265_p10 = scmp.lt.s32.totalorder (!%p230_p9), %s1808_s10, 31  ;;  %802 = vmatprep.subr.bf16.mxu1 (!%p230_p9), %v1720_v1  ;;  %v1554_v18 = vld [vmem:[%s2270_s2 + $0x18] sm:$0xff] (!%p230_p9)   ;;  %v1555_v23 = vld [vmem:[%s2270_s2 + $0x20] sm:$0xff] (!%p230_p9)   ;;  %vm773_vm1 = vcmask (!%p230_p9), 588800   ;;  %v1556_v36 = vld [vmem:[%s2270_s2 + $0x28] sm:$0xff] (!%p230_p9)  }
  0x11   : > { %803 = vmatpush1.bf16.msra.mxu1 (!%p230_p9), %v1551_v0  ;;  %v1557_v40 = vld [vmem:[%s2270_s2 + $0x30] sm:$0xff] (!%p230_p9)   ;;  %v1558_v47 = vld [vmem:[%s2270_s2 + $0x38] sm:$0xff] (!%p230_p9)   ;;  %v1559_v60 = vld [vmem:[%s2270_s2 + $0x40] sm:$0xff] (!%p230_p9)   ;;  %vm798_vm2 = vcmask (!%p230_p9), 1043456   ;;  %vm1722_vm3 = vmmov (!%p230_p9), 0   ;;  %vm1066_vm4 = vcmask (!%p230_p9), 261120   ;;  %s2226_s17 = scalar_lea.hbm (!%p230_p9), %s2274_s6, %s1808_s10 }
  0x12   : > { %804 = vmatprep.subr.bf16.mxu1 (!%p230_p9), %v1720_v1  ;;  %v1570_v61 = vld [vmem:[%s2271_s3] sm:$0xff] (!%p230_p9)   ;;  %vm2177_vm5 = vmpackc.low (!%p230_p9), %vm1066_vm4, %vm1066_vm4  ;;  %s1064_s30 = sld [smem:[#allocation2]] (!%p230_p9)  ;;  %s262_s11 = sand.u32 (!%p230_p9), 1, %s1710_s24  }
  0x13   : > { %1417 = vmatprep.subr.bf16.mxu0 (!%p230_p9), %v1570_v61  ;;  %s263_s12 = scalar_lea.vmem (!%p230_p9), [#allocation3], %s262_s11  ;;  %s1190_s18 = scalar_lea.sflag (!%p230_p9), [#allocation4], %s262_s11 }
  0x14   : > { %1418 = vmatpush3.bf16.msra.mxu0 (!%p230_p9), %v1570_v61  ;;  %s1202_s14 = sshll.u32 (!%p230_p9), %s263_s12, 4  ;;  %s1724_s20 = smov (!%p230_p9), [#allocation3]   ;;  %s2228_s14 = int_to_ptr.vmem [resolvable:$true] %s1202_s14 }
  0x15   : > { %805 = vmatpush1.bf16.msra.mxu1 (!%p230_p9), %v1552_v2  ;;  %s1656_s19 = scalar_lea.vmem (!%p230_p9), %s2228_s14, 16 }
  0x16   : > { %806 = vmatprep.subr.bf16.mxu1 (!%p230_p9), %v1720_v1  ;;  %p1657_p11 = scmp.ne.s32.totalorder (!%p230_p9), %s2228_s14, %s1656_s19 }
  0x17   : > { %s1819_s15 = scalar_select %p265_p10, %s1808_s10, 31 }
  0x18   : > { %p1658_p12 = pnand %p1657_p11, %p1798_p5 }
  0x19   : > { %s1274_s16 = sshll.u32 %s1819_s15, 2  ;;  %807 = vmatpush1.bf16.msra.mxu1 %v1553_v3  ;;  %s1348_s27 = sshll.u32 %s1819_s15, 3  ;;  %v1560_v3 = vld [vmem:[%s2270_s2 + $0x48] sm:$0xff]  }
  0x1a   : > { %s1829_s21 = scalar_lea.vmem %s2268_s0, %s1274_s16  ;;  %808 = vmatprep.subr.bf16.mxu1 %v1720_v1  ;;  %s1879_s13 = scalar_lea.vmem %s2269_s1, %s1348_s27 }
  0x1b   : > { %v1381_v4 = vld [vmem:[%s1829_s21 + $0x8] sm:$0xff]   ;;  %v1350_v5 = vld [vmem:[%s1829_s21] sm:$0xff]   ;;  %v1382_v6 = vld [vmem:[%s1829_s21 + $0x10] sm:$0xff]   ;;  %p1659_p13 = pneg %p1658_p12 }
  0x1c   : > { %v1835_v7 = vunpack.c.l.bf16 %v1381_v4  ;;  %v1837_v8 = vunpack.c.l.bf16 %v1350_v5  ;;  %v1839_v9 = vunpack.c.h.bf16 %v1381_v4  ;;  %v1841_v10 = vunpack.c.h.bf16 %v1350_v5  ;;  %v1383_v13 = vld [vmem:[%s1829_s21 + $0x18] sm:$0xff]   ;;  %v1384_v28 = vld [vmem:[%s1829_s21 + $0x20] sm:$0xff]   ;;  %v1385_v35 = vld [vmem:[%s1829_s21 + $0x28] sm:$0xff]  }
  0x1d   : > { %v1843_v11 = vunpack.c.h.bf16 %v1382_v6  ;;  %v1845_v12 = vunpack.c.l.bf16 %v1382_v6  ;;  %v1863_v21 = vunpack.c.h.bf16 %v1383_v13  ;;  %v1865_v22 = vunpack.c.l.bf16 %v1383_v13  ;;  %809 = vmatpush1.bf16.msra.mxu1 %v1554_v18  ;;  %v1566_v37 = vld [vmem:[%s1879_s13 + $0x4] ss:$8 sps:$4 sm:$0xff]   ;;  %v1386_v39 = vld [vmem:[%s1829_s21 + $0x30] sm:$0xff]   ;;  %v1387_v46 = vld [vmem:[%s1829_s21 + $0x38] sm:$0xff]   ;;  %s1660_s21 = sshll.u32 %s1724_s20, 4  ;;  %s1661_s21 = int_to_ptr.vmem [resolvable:$false] %s1660_s21 }
  0x1e   : > { %v312_v14 = vmul.f32 %v1835_v7, %v1835_v7  ;;  %v310_v15 = vmul.f32 %v1837_v8, %v1837_v8  ;;  %v313_v16 = vmul.f32 %v1839_v9, %v1839_v9  ;;  %v311_v17 = vmul.f32 %v1841_v10, %v1841_v10  ;;  %810 = vmatprep.subr.bf16.mxu1 %v1720_v1  ;;  %v1574_v4 = vld [vmem:[%s2271_s3 + $0x8] sm:$0xff]   ;;  %v1561_v13 = vld [vmem:[%s2270_s2 + $0x50] sm:$0xff]   ;;  %s1662_s22 = scalar_lea.vmem %s1661_s21, 32  ;;  %p1663_p0 = scmp.lt.s32.totalorder %s2228_s14, %s1661_s21 }
  0x1f   : > { %v315_v26 = vmul.f32 %v1843_v11, %v1843_v11  ;;  %v314_v27 = vmul.f32 %v1845_v12, %v1845_v12  ;;  %v317_v29 = vmul.f32 %v1863_v21, %v1863_v21  ;;  %v316_v30 = vmul.f32 %v1865_v22, %v1865_v22  ;;  %1319 = vmatprep.mubr.msk.bf16.mxu1 %vm773_vm1, %v1566_v37  ;;  %p1664_p1 = scmp.lt.s32.totalorder %s1662_s22, %s1656_s19 }
  0x20   : > { %v333_v19 = vsel %vm326_vm0, %v312_v14, 0.0  ;;  %v327_v20 = vsel %vm326_vm0, %v310_v15, 0.0  ;;  %v336_v24 = vsel %vm326_vm0, %v313_v16, 0.0  ;;  %v330_v25 = vsel %vm326_vm0, %v311_v17, 0.0  ;;  %1419 = vmatprep.subr.bf16.mxu0 %v1574_v4  ;;  %v1575_v14 = vld [vmem:[%s2271_s3 + $0x10] sm:$0xff]   ;;  %v1562_v15 = vld [vmem:[%s2270_s2 + $0x58] sm:$0xff]  }
  0x21   : > { %334 = vadd.xlane.f32.xlu1 %v333_v19  ;;  %328 = vadd.xlane.f32.xlu0 %v327_v20  ;;  %v342_v31 = vsel %vm326_vm0, %v315_v26, 0.0  ;;  %v339_v32 = vsel %vm326_vm0, %v314_v27, 0.0  ;;  %v1889_v33 = vunpack.c.h.bf16 %v1384_v28  ;;  %v1891_v34 = vunpack.c.l.bf16 %v1384_v28  ;;  %v1563_v16 = vld [vmem:[%s2270_s2 + $0x60] ss:$0 sps:$4 sm:$0xff]   ;;  %v1579_v17 = vld [vmem:[%s2271_s3 + $0x18] sm:$0xff]   ;;  %p1665_p2 = por %p1664_p1, %p1663_p0 }
  0x22   : > { %811 = vmatpush1.bf16.msra.mxu1 %v1555_v23  ;;  %v348_v38 = vsel %vm326_vm0, %v317_v29, 0.0  ;;  %v345_v41 = vsel %vm326_vm0, %v316_v30, 0.0  ;;  %v1910_v44 = vunpack.c.h.bf16 %v1385_v35  ;;  %v1912_v45 = vunpack.c.l.bf16 %v1385_v35  ;;  %1420 = vmatpush3.bf16.msra.mxu0 %v1574_v4  ;;  %v1564_v19 = vld [vmem:[%s1879_s13] ss:$8 sps:$4 sm:$0xff]   ;;  %v1567_v20 = vld [vmem:[%s1879_s13 + $0x14] ss:$8 sps:$4 sm:$0xff]  }
  0x23   : > { %812 = vmatprep.subr.bf16.mxu1 %v1720_v1  ;;  %v319_v42 = vmul.f32 %v1889_v33, %v1889_v33  ;;  %v318_v43 = vmul.f32 %v1891_v34, %v1891_v34  ;;  %v1919_v48 = vunpack.c.h.bf16 %v1386_v39  ;;  %v1921_v49 = vunpack.c.l.bf16 %v1386_v39  ;;  %1421 = vmatprep.subr.bf16.mxu0 %v1575_v14  ;;  %v1569_v23 = vld [vmem:[%s1879_s13 + $0x10] ss:$8 sps:$4 sm:$0xff]   ;;  %v1580_v27 = vld [vmem:[%s1879_s13 + $0x44] ss:$8 sps:$4 sm:$0xff]   ;;  %v1582_v28 = vld [vmem:[%s1879_s13 + $0x40] ss:$8 sps:$4 sm:$0xff]   ;;  %p1666_p3 = pnand %p1665_p2, %p1659_p13 }
  0x24   : > { %v321_v52 = vmul.f32 %v1910_v44, %v1910_v44  ;;  %v320_v53 = vmul.f32 %v1912_v45, %v1912_v45  ;;  %v1930_v54 = vunpack.c.h.bf16 %v1387_v46  ;;  %v1932_v55 = vunpack.c.l.bf16 %v1387_v46  ;;  %v1578_v26 = vld [vmem:[%s1879_s13 + $0x30] ss:$8 sps:$4 sm:$0xff]   ;;  %v1583_v29 = vld [vmem:[%s1879_s13 + $0x54] ss:$8 sps:$4 sm:$0xff]  }
  0x25   : > { %337 = vadd.xlane.f32.xlu1 %v336_v24  ;;  %331 = vadd.xlane.f32.xlu0 %v330_v25  ;;  %v354_v50 = vsel %vm326_vm0, %v319_v42, 0.0  ;;  %v351_v51 = vsel %vm326_vm0, %v318_v43, 0.0  ;;  %v323_v58 = vmul.f32 %v1919_v48, %v1919_v48  ;;  %v322_v59 = vmul.f32 %v1921_v49, %v1921_v49  ;;  %v1571_v24 = vld [vmem:[%s1879_s13 + $0x24] ss:$8 sps:$4 sm:$0xff]   ;;  %v1576_v25 = vld [vmem:[%s1879_s13 + $0x34] ss:$8 sps:$4 sm:$0xff]  }
  0x26   : > { %813 = vmatpush1.bf16.msra.mxu1 %v1556_v36  ;;  %v360_v56 = vsel %vm326_vm0, %v321_v52, 0.0  ;;  %v357_v57 = vsel %vm326_vm0, %v320_v53, 0.0  ;;  %v325_v0 = vmul.f32 %v1930_v54, %v1930_v54  ;;  %v324_v2 = vmul.f32 %v1932_v55, %v1932_v55  ;;  %1422 = vmatpush3.bf16.msra.mxu0 %v1575_v14  ;;  %v1585_v30 = vld [vmem:[%s1879_s13 + $0x50] ss:$8 sps:$4 sm:$0xff]   ;;  %v1589_v35 = vld [vmem:[%s1879_s13 + $0x74] ss:$8 sps:$4 sm:$0xff]  }
  0x27   : > { %814 = vmatprep.subr.bf16.mxu1 %v1720_v1  ;;  %v366_v62 = vsel %vm326_vm0, %v323_v58, 0.0  ;;  %v363_v63 = vsel %vm326_vm0, %v322_v59, 0.0  ;;  %1423 = vmatprep.subr.bf16.mxu0 %v1579_v17  ;;  %v800_v18 = vsel %vm798_vm2, %v1563_v16, 0  ;;  %v1591_v36 = vld [vmem:[%s1879_s13 + $0x70] ss:$8 sps:$4 sm:$0xff]  }
  0x28   : > { %v372_v5 = vsel %vm326_vm0, %v325_v0, 0.0  ;;  %v369_v6 = vsel %vm326_vm0, %v324_v2, 0.0 }
  0x29   : > { %343 = vadd.xlane.f32.xlu1 %v342_v31  ;;  %340 = vadd.xlane.f32.xlu0 %v339_v32  ;;  %v1586_v31 = vld [vmem:[%s1879_s13 + $0x64] ss:$8 sps:$4 sm:$0xff]   ;;  %v1588_v32 = vld [vmem:[%s1879_s13 + $0x60] ss:$8 sps:$4 sm:$0xff]  }
  0x2a   : > { %815 = vmatpush1.bf16.msra.mxu1 %v1557_v40  ;;  %1424 = vmatpush3.bf16.msra.mxu0 %v1579_v17 }
  0x2b   : > { %816 = vmatprep.subr.bf16.mxu1 %v1720_v1 }
  0x2d   : > { %349 = vadd.xlane.f32.xlu1 %v348_v38  ;;  %346 = vadd.xlane.f32.xlu0 %v345_v41 }
  0x2e   : > { %817 = vmatpush1.bf16.msra.mxu1 %v1558_v47 }
  0x2f   : > { %818 = vmatprep.subr.bf16.mxu1 %v1720_v1 }
  0x31   : > { %355 = vadd.xlane.f32.xlu1 %v354_v50  ;;  %352 = vadd.xlane.f32.xlu0 %v351_v51 }
  0x32   : > { %819 = vmatpush1.bf16.msra.mxu1 %v1559_v60 }
  0x33   : > { %820 = vmatprep.subr.bf16.mxu1 %v1720_v1 }
  0x35   : > { %361 = vadd.xlane.f32.xlu1 %v360_v56  ;;  %358 = vadd.xlane.f32.xlu0 %v357_v57 }
  0x36   : > { %821 = vmatpush1.bf16.msra.mxu1 %v1560_v3 }
  0x37   : > { %822 = vmatprep.subr.bf16.mxu1 %v1720_v1 }
  0x39   : > { %367 = vadd.xlane.f32.xlu1 %v366_v62  ;;  %364 = vadd.xlane.f32.xlu0 %v363_v63 }
  0x3a   : > { %823 = vmatpush1.bf16.msra.mxu1 %v1561_v13 }
  0x3b   : > { %824 = vmatprep.subr.bf16.mxu1 %v1720_v1 }
  0x3d   : > { %373 = vadd.xlane.f32.xlu1 %v372_v5  ;;  %370 = vadd.xlane.f32.xlu0 %v369_v6 }
  0x3e   : > { %825 = vmatpush1.bf16.msra.mxu1 %v1562_v15 }
  0x3f   : > { %826 = vmatprep.subr.bf16.mxu1 %v1720_v1  ;;  %v1573_v1 = vld [vmem:[%s1879_s13 + $0x20] ss:$8 sps:$4 sm:$0xff]  }
  0x42   : > { %827 = vmatpush1.bf16.msra.mxu1 %v800_v18 }
  0x45   : > { %835 = vmatmul.mubr.bf16.vlgmr.msra.gmra.mrb[0].mxu1 %v1564_v19 }
  0x46   : > { %1320 = vmatprep.mubr.msk.bf16.mxu1 %vm773_vm1, %v1567_v20 }
  0x4d   : > { %843 = vmatmul.mubr.bf16.gmra.mrb[4].mxu1 %v1569_v23 }
  0x4e   : > { %1321 = vmatprep.mubr.msk.bf16.mxu1 %vm773_vm1, %v1571_v24 }
  0x55   : > { %851 = vmatmul.mubr.bf16.gmra.mrb[8].mxu1 %v1573_v1 }
  0x56   : > { %1322 = vmatprep.mubr.msk.bf16.mxu1 %vm773_vm1, %v1576_v25 }
  0x5d   : > { %859 = vmatmul.mubr.bf16.gmra.mrb[12].mxu1 %v1578_v26 }
  0x5e   : > { %1323 = vmatprep.mubr.msk.bf16.mxu1 %vm773_vm1, %v1580_v27 }
  0x65   : > { %867 = vmatmul.mubr.bf16.gmra.mrb[16].mxu1 %v1582_v28 }
  0x66   : > { %1324 = vmatprep.mubr.msk.bf16.mxu1 %vm773_vm1, %v1583_v29 }
  0x6d   : > { %875 = vmatmul.mubr.bf16.gmra.mrb[20].mxu1 %v1585_v30 }
  0x6e   : > { %1325 = vmatprep.mubr.msk.bf16.mxu1 %vm773_vm1, %v1586_v31 }
  0x75   : > { %883 = vmatmul.mubr.bf16.gmra.mrb[24].mxu1 %v1588_v32 }
  0x76   : > { %1326 = vmatprep.mubr.msk.bf16.mxu1 %vm773_vm1, %v1589_v35 }
  0x7d   : > { %891 = vmatmul.mubr.bf16.gmra.mrb[28].mxu1 %v1591_v36 }
  0xae   : > { %v335_v37 = vpop.xlane.xlu1 %334  ;;  %v329_v38 = vpop.xlane.xlu0 %328 }
  0xaf   : > { %v377_v39 = vmax.f32 %v335_v37, 1e-24  ;;  %v375_v40 = vmax.f32 %v329_v38, 1e-24 }
  0xb1   : > { %1592 = vrsqrt.f32 %v377_v39 }
  0xb2   : > { %v338_v41 = vpop.xlane.xlu1 %337  ;;  %v332_v42 = vpop.xlane.xlu0 %331  ;;  %1594 = vrsqrt.f32 %v375_v40 }
  0xb3   : > { %v378_v43 = vmax.f32 %v338_v41, 1e-24  ;;  %v376_v46 = vmax.f32 %v332_v42, 1e-24 }
  0xb5   : > { %1596 = vrsqrt.f32 %v378_v43 }
  0xb6   : > { %1598 = vrsqrt.f32 %v376_v46  ;;  %v344_v47 = vpop.xlane.xlu1 %343  ;;  %v341_v50 = vpop.xlane.xlu0 %340 }
  0xb7   : > { %v380_v51 = vmax.f32 %v344_v47, 1e-24  ;;  %v379_v52 = vmax.f32 %v341_v50, 1e-24 }
  0xb9   : > { %1600 = vrsqrt.f32 %v380_v51 }
  0xba   : > { %1602 = vrsqrt.f32 %v379_v52  ;;  %v350_v53 = vpop.xlane.xlu1 %349  ;;  %v347_v56 = vpop.xlane.xlu0 %346 }
  0xbb   : > { %v382_v57 = vmax.f32 %v350_v53, 1e-24  ;;  %v381_v58 = vmax.f32 %v347_v56, 1e-24  ;;  %v1593_v59 = vpop.eup %1592 }
  0xbc   : > { %v1595_v60 = vpop.eup %1594  ;;  %v409_v4 = vmul.f32 %v1593_v59, %v1835_v7 }
  0xbd   : > { %1604 = vrsqrt.f32 %v382_v57  ;;  %v407_v6 = vmul.f32 %v1595_v60, %v1837_v8 }
  0xbe   : > { %1606 = vrsqrt.f32 %v381_v58  ;;  %v356_v61 = vpop.xlane.xlu1 %355  ;;  %v353_v62 = vpop.xlane.xlu0 %352 }
  0xbf   : > { %v1597_v63 = vpop.eup %1596  ;;  %v384_v0 = vmax.f32 %v356_v61, 1e-24  ;;  %v383_v2 = vmax.f32 %v353_v62, 1e-24 }
  0xc0   : > { %v1599_v3 = vpop.eup %1598  ;;  %v410_v5 = vmul.f32 %v1597_v63, %v1839_v9 }
  0xc1   : > { %1608 = vrsqrt.f32 %v384_v0  ;;  %v408_v13 = vmul.f32 %v1599_v3, %v1841_v10 }
  0xc2   : > { %1610 = vrsqrt.f32 %v383_v2  ;;  %v362_v14 = vpop.xlane.xlu1 %361  ;;  %v359_v15 = vpop.xlane.xlu0 %358  ;;  %v466_v16 = vpack.c.bf16 %v410_v5, %v409_v4 }
  0xc3   : > { %v1601_v17 = vpop.eup %1600  ;;  %v386_v18 = vmax.f32 %v362_v14, 1e-24  ;;  %v385_v19 = vmax.f32 %v359_v15, 1e-24  ;;  %v465_v20 = vpack.c.bf16 %v408_v13, %v407_v6  ;;  %v1721_v14 = vmov 0.0|0.0  }
  0xc4   : > { %v1603_v23 = vpop.eup %1602  ;;  %v412_v24 = vmul.f32 %v1601_v17, %v1843_v11  ;;  %1476 = vmatprep.subr.bf16.mxu0 %v1721_v14 }
  0xc5   : > { %1612 = vrsqrt.f32 %v386_v18  ;;  %1425 = vmatprep.mubr.msk.bf16.mxu0 %vm326_vm0, %v465_v20  ;;  %v411_v7 = vmul.f32 %v1603_v23, %v1845_v12 }
  0xc6   : > { %1614 = vrsqrt.f32 %v385_v19  ;;  %1426 = vmatmul.mubr.msk.bf16.vlgmr.msra.gmra.mrb[0].mxu0 %vm326_vm0, %v466_v16  ;;  %v368_v8 = vpop.xlane.xlu1 %367  ;;  %v365_v9 = vpop.xlane.xlu0 %364 }
  0xc7   : > { %v1605_v10 = vpop.eup %1604  ;;  %v388_v1 = vmax.f32 %v368_v8, 1e-24  ;;  %v387_v25 = vmax.f32 %v365_v9, 1e-24  ;;  %v467_v26 = vpack.c.bf16 %v412_v24, %v411_v7 }
  0xc8   : > { %v1607_v27 = vpop.eup %1606  ;;  %v414_v28 = vmul.f32 %v1605_v10, %v1863_v21 }
  0xc9   : > { %1616 = vrsqrt.f32 %v388_v1  ;;  %1429 = vmatprep.mubr.msk.bf16.mxu0 %vm326_vm0, %v467_v26  ;;  %v413_v11 = vmul.f32 %v1607_v27, %v1865_v22  ;;  %v1723_v1 = vmov 0.0   ;;  %v2048_v26 = vld [vmem:[%s2272_s4] ss:$0 sm:$0xff] }
  0xca   : > { %1618 = vrsqrt.f32 %v387_v25  ;;  %v374_v29 = vpop.xlane.xlu1 %373  ;;  %v371_v12 = vpop.xlane.xlu0 %370 }
  0xcb   : > { %v1609_v30 = vpop.eup %1608  ;;  %v390_v31 = vmax.f32 %v374_v29, 1e-24  ;;  %v389_v32 = vmax.f32 %v371_v12, 1e-24  ;;  %v468_v35 = vpack.c.bf16 %v414_v28, %v413_v11 }
  0xcc   : > { %v1611_v36 = vpop.eup %1610  ;;  %v416_v37 = vmul.f32 %v1609_v30, %v1889_v33 }
  0xcd   : > { %1620 = vrsqrt.f32 %v390_v31  ;;  %v415_v38 = vmul.f32 %v1611_v36, %v1891_v34 }
  0xce   : > { %1622 = vrsqrt.f32 %v389_v32  ;;  %1430 = vmatmul.mubr.msk.bf16.gmra.mrb[4].mxu0 %vm326_vm0, %v468_v35 }
  0xcf   : > { %v1613_v21 = vpop.eup %1612  ;;  %v469_v39 = vpack.c.bf16 %v416_v37, %v415_v38 }
  0xd0   : > { %v1615_v40 = vpop.eup %1614  ;;  %v418_v22 = vmul.f32 %v1613_v21, %v1910_v44 }
  0xd1   : > { %1433 = vmatprep.mubr.msk.bf16.mxu0 %vm326_vm0, %v469_v39  ;;  %v417_v41 = vmul.f32 %v1615_v40, %v1912_v45 }
  0xd3   : > { %v1617_v42 = vpop.eup %1616  ;;  %v470_v43 = vpack.c.bf16 %v418_v22, %v417_v41 }
  0xd4   : > { %v1619_v46 = vpop.eup %1618  ;;  %v420_v33 = vmul.f32 %v1617_v42, %v1919_v48 }
  0xd5   : > { %v419_v47 = vmul.f32 %v1619_v46, %v1921_v49 }
  0xd6   : > { %1434 = vmatmul.mubr.msk.bf16.gmra.mrb[8].mxu0 %vm326_vm0, %v470_v43 }
  0xd7   : > { %v1621_v34 = vpop.eup %1620  ;;  %v471_v50 = vpack.c.bf16 %v420_v33, %v419_v47 }
  0xd8   : > { %v1623_v51 = vpop.eup %1622  ;;  %v422_v52 = vmul.f32 %v1621_v34, %v1930_v54 }
  0xd9   : > { %1437 = vmatprep.mubr.msk.bf16.mxu0 %vm326_vm0, %v471_v50  ;;  %v421_v44 = vmul.f32 %v1623_v51, %v1932_v55 }
  0xdb   : > { %v472_v53 = vpack.c.bf16 %v422_v52, %v421_v44 }
  0xde   : > { %1438 = vmatmul.mubr.msk.bf16.gmra.mrb[12].mxu0 %vm326_vm0, %v472_v53 }
  0xdf   : > { %1473 = vmatprep.mubr.msk.f32.mxu0 %vm1722_vm3, %v1723_v1 }
 0x118   : > { %v836_v45 = vpop.f32.mrb[0].mxu1 }
 0x119   : > { %v838_v56 = vpop.f32.mrb[1].mxu1 }
 0x11a   : > { %v839_v57 = vpop.f32.mrb[2].mxu1 }
 0x11b   : > { %v841_v48 = vpop.f32.mrb[3].mxu1 }
 0x120   : > { %v844_v58 = vpop.f32.mrb[4].mxu1 }
 0x121   : > { %v846_v49 = vpop.f32.mrb[5].mxu1 }
 0x122   : > { %v847_v59 = vpop.f32.mrb[6].mxu1 }
 0x123   : > { %v849_v60 = vpop.f32.mrb[7].mxu1 }
 0x128   : > { %v852_v61 = vpop.f32.mrb[8].mxu1 }
 0x129   : > { %v854_v62 = vpop.f32.mrb[9].mxu1 }
 0x12a   : > { %v2026_v63 = vpop.f32.mrb[10].mxu1 }
 0x12b   : > { %v857_v54 = vpop.f32.mrb[11].mxu1 }
 0x130   : > { %v860_v0 = vpop.f32.mrb[12].mxu1 }
 0x131   : > { %v862_v2 = vpop.f32.mrb[13].mxu1 }
 0x132   : > { %v863_v3 = vpop.f32.mrb[14].mxu1 }
 0x133   : > { %v865_v55 = vpop.f32.mrb[15].mxu1 }
 0x138   : > { %v2028_v4 = vpop.f32.mrb[16].mxu1 }
 0x139   : > { %v870_v5 = vpop.f32.mrb[17].mxu1 }
 0x13a   : > { %v2030_v6 = vpop.f32.mrb[18].mxu1 }
 0x13b   : > { %v873_v13 = vpop.f32.mrb[19].mxu1 }
 0x140   : > { %v2033_v15 = vpop.f32.mrb[20].mxu1 }
 0x141   : > { %v878_v16 = vpop.f32.mrb[21].mxu1 }
 0x142   : > { %v2035_v17 = vpop.f32.mrb[22].mxu1 }
 0x143   : > { %v881_v18 = vpop.f32.mrb[23].mxu1 }
 0x148   : > { %v2037_v19 = vpop.f32.mrb[24].mxu1 }
 0x149   : > { %v886_v20 = vpop.f32.mrb[25].mxu1 }
 0x14a   : > { %v2039_v23 = vpop.f32.mrb[26].mxu1 }
 0x14b   : > { %v889_v24 = vpop.f32.mrb[27].mxu1 }
 0x150   : > { %v2041_v7 = vpop.f32.mrb[28].mxu1 }
 0x151   : > { %v894_v8 = vpop.f32.mrb[29].mxu1 }
 0x152   : > { %v2043_v9 = vpop.f32.mrb[30].mxu1 }
 0x153   : > { %v897_v10 = vpop.f32.mrb[31].mxu1 }
 0x199   : > { %v1427_v25 = vpop.f32.mrb[0].mxu0 }
 0x19a   : > { %v845_v27 = vadd.f32 %v1427_v25, %v844_v58  ;;  %v563_v28 = vpop.f32.mrb[1].mxu0 }
 0x19b   : > { %v837_v11 = vadd.f32 %v836_v45, %v563_v28  ;;  %v1428_v29 = vpop.f32.mrb[2].mxu0 }
 0x19c   : > { %v905_v12 = vadd.f32 %v2048_v26, %v845_v27  ;;  %v848_v30 = vadd.f32 %v1428_v29, %v847_v59  ;;  %v566_v31 = vpop.f32.mrb[3].mxu0 }
 0x19d   : > { %v903_v32 = vadd.f32 %v2048_v26, %v837_v11  ;;  %v840_v35 = vadd.f32 %v839_v57, %v566_v31 }
 0x19e   : > { %v937_v36 = vmul.f32 0.044715, %v905_v12  ;;  %v2053_v37 = vadd.f32 %v2048_v26, %v848_v30  ;;  %v2079_v5 = vmul.f32 0.5, %v905_v12 }
 0x19f   : > { %v935_v38 = vmul.f32 0.044715, %v903_v32  ;;  %v2056_v21 = vadd.f32 %v2048_v26, %v840_v35  ;;  %v2081_v13 = vmul.f32 0.5, %v903_v32 }
 0x1a0   : > { %v953_v39 = vmul.f32 %v937_v36, %v905_v12  ;;  %v938_v40 = vmul.f32 0.044715, %v2053_v37 }
 0x1a1   : > { %v951_v22 = vmul.f32 %v935_v38, %v903_v32  ;;  %v936_v41 = vmul.f32 0.044715, %v2056_v21  ;;  %v1431_v42 = vpop.f32.mrb[4].mxu0 }
 0x1a2   : > { %v969_v43 = vmul.f32 %v953_v39, %v905_v12  ;;  %v954_v46 = vmul.f32 %v938_v40, %v2053_v37  ;;  %v861_v33 = vadd.f32 %v1431_v42, %v860_v0  ;;  %v579_v47 = vpop.f32.mrb[5].mxu0 }
 0x1a3   : > { %v967_v34 = vmul.f32 %v951_v22, %v903_v32  ;;  %v952_v50 = vmul.f32 %v936_v41, %v2056_v21  ;;  %v853_v51 = vadd.f32 %v852_v61, %v579_v47  ;;  %v1432_v52 = vpop.f32.mrb[6].mxu0 }
 0x1a4   : > { %v985_v44 = vadd.f32 %v969_v43, %v905_v12  ;;  %v970_v53 = vmul.f32 %v954_v46, %v2053_v37  ;;  %v2064_v45 = vadd.f32 %v2048_v26, %v861_v33  ;;  %v864_v56 = vadd.f32 %v1432_v52, %v863_v3  ;;  %v582_v57 = vpop.f32.mrb[7].mxu0 }
 0x1a5   : > { %v983_v48 = vadd.f32 %v967_v34, %v903_v32  ;;  %v968_v58 = vmul.f32 %v952_v50, %v2056_v21  ;;  %v2068_v49 = vadd.f32 %v2048_v26, %v853_v51  ;;  %v856_v59 = vadd.f32 %v2026_v63, %v582_v57 }
 0x1a6   : > { %v1001_v60 = vmul.f32 0.7978846, %v985_v44  ;;  %v986_v61 = vadd.f32 %v970_v53, %v2053_v37  ;;  %v941_v62 = vmul.f32 0.044715, %v2064_v45  ;;  %v2077_v55 = vadd.f32 %v2048_v26, %v864_v56 }
 0x1a7   : > { %v999_v54 = vmul.f32 0.7978846, %v983_v48  ;;  %v984_v0 = vadd.f32 %v968_v58, %v2056_v21  ;;  %v939_v2 = vmul.f32 0.044715, %v2068_v49  ;;  %v2085_v16 = vadd.f32 %v2048_v26, %v856_v59 }
 0x1a8   : > { %v957_v3 = vmul.f32 %v941_v62, %v2064_v45  ;;  %1624 = vtanh.f32 %v1001_v60  ;;  %v1002_v20 = vmul.f32 0.7978846, %v986_v61  ;;  %v942_v8 = vmul.f32 0.044715, %v2077_v55 }
 0x1a9   : > { %v955_v63 = vmul.f32 %v939_v2, %v2068_v49  ;;  %v1435_v18 = vpop.f32.mrb[8].mxu0  ;;  %1626 = vtanh.f32 %v999_v54  ;;  %v1000_v1 = vmul.f32 0.7978846, %v984_v0  ;;  %v940_v27 = vmul.f32 0.044715, %v2085_v16 }
 0x1aa   : > { %v973_v24 = vmul.f32 %v957_v3, %v2064_v45  ;;  %v595_v10 = vpop.f32.mrb[9].mxu0  ;;  %v958_v29 = vmul.f32 %v942_v8, %v2077_v55  ;;  %v877_v12 = vadd.f32 %v1435_v18, %v2033_v15  ;;  %1628 = vtanh.f32 %v1002_v20 }
 0x1ab   : > { %v971_v25 = vmul.f32 %v955_v63, %v2068_v49  ;;  %v1436_v28 = vpop.f32.mrb[10].mxu0  ;;  %v869_v30 = vadd.f32 %v2028_v4, %v595_v10  ;;  %v956_v35 = vmul.f32 %v940_v27, %v2085_v16  ;;  %v2119_v33 = vmul.f32 0.5, %v2056_v21 }
 0x1ac   : > { %v989_v11 = vadd.f32 %v973_v24, %v2064_v45  ;;  %v598_v31 = vpop.f32.mrb[11].mxu0  ;;  %v880_v36 = vadd.f32 %v1436_v28, %v2035_v17  ;;  %v974_v40 = vmul.f32 %v958_v29, %v2077_v55  ;;  %v2101_v22 = vadd.f32 %v2048_v26, %v877_v12 }
 0x1ad   : > { %v987_v32 = vadd.f32 %v971_v25, %v2068_v49  ;;  %v872_v38 = vadd.f32 %v2030_v6, %v598_v31  ;;  %v2104_v41 = vadd.f32 %v2048_v26, %v869_v30  ;;  %v972_v4 = vmul.f32 %v956_v35, %v2085_v16 }
 0x1ae   : > { %v1005_v39 = vmul.f32 0.7978846, %v989_v11  ;;  %v2108_v42 = vadd.f32 %v2048_v26, %v880_v36  ;;  %v2114_v6 = vmul.f32 0.5, %v2053_v37  ;;  %v990_v17 = vadd.f32 %v974_v40, %v2077_v55 }
 0x1af   : > { %v1003_v15 = vmul.f32 0.7978846, %v987_v32  ;;  %v2111_v43 = vadd.f32 %v2048_v26, %v872_v38  ;;  %v945_v46 = vmul.f32 0.044715, %v2101_v22  ;;  %1630 = vtanh.f32 %v1000_v1 }
 0x1b0   : > { %v988_v47 = vadd.f32 %v972_v4, %v2085_v16  ;;  %v943_v34 = vmul.f32 0.044715, %v2104_v41  ;;  %1632 = vtanh.f32 %v1005_v39  ;;  %v1006_v51 = vmul.f32 0.7978846, %v990_v17 }
 0x1b1   : > { %v1439_v50 = vpop.f32.mrb[12].mxu0  ;;  %v961_v52 = vmul.f32 %v945_v46, %v2101_v22  ;;  %v946_v37 = vmul.f32 0.044715, %v2108_v42  ;;  %1634 = vtanh.f32 %v1003_v15  ;;  %v944_v21 = vmul.f32 0.044715, %v2111_v43 }
 0x1b2   : > { %v611_v44 = vpop.f32.mrb[13].mxu0  ;;  %v1004_v53 = vmul.f32 0.7978846, %v988_v47  ;;  %v959_v56 = vmul.f32 %v943_v34, %v2104_v41  ;;  %v1625_v48 = vpop.eup %1624  ;;  %1636 = vtanh.f32 %v1006_v51  ;;  %v893_v2 = vadd.f32 %v1439_v50, %v2041_v7 }
 0x1b3   : > { %v1440_v57 = vpop.f32.mrb[14].mxu0  ;;  %v977_v58 = vmul.f32 %v961_v52, %v2101_v22  ;;  %v962_v59 = vmul.f32 %v946_v37, %v2108_v42  ;;  %v885_v60 = vadd.f32 %v2037_v19, %v611_v44  ;;  %v1627_v62 = vpop.eup %1626  ;;  %v960_v0 = vmul.f32 %v944_v21, %v2111_v43 }
 0x1b4   : > { %v614_v61 = vpop.f32.mrb[15].mxu0  ;;  %1638 = vtanh.f32 %v1004_v53  ;;  %v975_v54 = vmul.f32 %v959_v56, %v2104_v41  ;;  %v2142_v8 = vadd.f32 %v2048_v26, %v893_v2  ;;  %v896_v10 = vadd.f32 %v1440_v57, %v2043_v9  ;;  %v1629_v12 = vpop.eup %1628 }
 0x1b5   : > { %v993_v3 = vadd.f32 %v977_v58, %v2101_v22  ;;  %v978_v63 = vmul.f32 %v962_v59, %v2108_v42  ;;  %v2136_v18 = vadd.f32 %v2048_v26, %v885_v60  ;;  %v888_v20 = vadd.f32 %v2039_v23, %v614_v61 }
 0x1b6   : > { %v991_v19 = vadd.f32 %v975_v54, %v2104_v41  ;;  %v976_v24 = vmul.f32 %v960_v0, %v2111_v43  ;;  %v2146_v7 = vmul.f32 0.5, %v2064_v45  ;;  %v923_v23 = vmul.f32 0.5, %v2068_v49 }
 0x1b7   : > { %v1009_v1 = vmul.f32 0.7978846, %v993_v3  ;;  %v994_v25 = vadd.f32 %v978_v63, %v2108_v42  ;;  %v947_v27 = vmul.f32 0.044715, %v2136_v18  ;;  %v949_v29 = vmul.f32 0.044715, %v2142_v8 }
 0x1b8   : > { %v1007_v28 = vmul.f32 0.7978846, %v991_v19  ;;  %v992_v11 = vadd.f32 %v976_v24, %v2111_v43  ;;  %v2155_v45 = vadd.f32 %v2048_v26, %v888_v20  ;;  %v2159_v49 = vadd.f32 %v2048_v26, %v896_v10 }
 0x1b9   : > { %1640 = vtanh.f32 %v1009_v1  ;;  %v1010_v30 = vmul.f32 0.7978846, %v994_v25  ;;  %v963_v9 = vmul.f32 %v947_v27, %v2136_v18  ;;  %v1631_v31 = vpop.eup %1630  ;;  %v965_v35 = vmul.f32 %v949_v29, %v2142_v8 }
 0x1ba   : > { %1642 = vtanh.f32 %v1007_v28  ;;  %v1008_v32 = vmul.f32 0.7978846, %v992_v11  ;;  %v1633_v36 = vpop.eup %1632  ;;  %v926_v38 = vmul.f32 0.5, %v2077_v55  ;;  %v948_v40 = vmul.f32 0.044715, %v2155_v45 }
 0x1bb   : > { %1644 = vtanh.f32 %v1010_v30  ;;  %v979_v39 = vmul.f32 %v963_v9, %v2136_v18  ;;  %v1635_v15 = vpop.eup %1634  ;;  %v924_v4 = vmul.f32 0.5, %v2085_v16  ;;  %v981_v17 = vmul.f32 %v965_v35, %v2142_v8 }
 0x1bc   : > { %1646 = vtanh.f32 %v1008_v32  ;;  %v950_v46 = vmul.f32 0.044715, %v2159_v49  ;;  %v1637_v47 = vpop.eup %1636  ;;  %v964_v34 = vmul.f32 %v948_v40, %v2155_v45  ;;  %v1031_v50 = vadd.f32 1.0, %v1627_v62 }
 0x1bd   : > { %v995_v26 = vadd.f32 %v979_v39, %v2136_v18  ;;  %v1032_v55 = vadd.f32 1.0, %v1631_v31  ;;  %v997_v52 = vadd.f32 %v981_v17, %v2142_v8  ;;  %v1033_v44 = vadd.f32 1.0, %v1625_v48 }
 0x1be   : > { %v1639_v51 = vpop.eup %1638  ;;  %v966_v37 = vmul.f32 %v950_v46, %v2159_v49  ;;  %v1034_v53 = vadd.f32 1.0, %v1629_v12  ;;  %v980_v56 = vmul.f32 %v964_v34, %v2155_v45  ;;  %v1047_v21 = vmul.f32 %v1031_v50, %v2081_v13 }
 0x1bf   : > { %v1011_v16 = vmul.f32 0.7978846, %v995_v26  ;;  %v1048_v57 = vmul.f32 %v1032_v55, %v2119_v33  ;;  %v1013_v58 = vmul.f32 0.7978846, %v997_v52  ;;  %v1049_v61 = vmul.f32 %v1033_v44, %v2079_v5 }
 0x1c0   : > { %v982_v59 = vmul.f32 %v966_v37, %v2159_v49  ;;  %v1050_v48 = vmul.f32 %v1034_v53, %v2114_v6  ;;  %v996_v62 = vadd.f32 %v980_v56, %v2155_v45  ;;  %v1035_v13 = vadd.f32 1.0, %v1635_v15 }
 0x1c1   : > { %1648 = vtanh.f32 %v1011_v16  ;;  %v1477_v54 = vpack.c.bf16 %v1048_v57, %v1047_v21  ;;  %v1036_v2 = vadd.f32 1.0, %v1639_v51  ;;  %v929_v63 = vmul.f32 0.5, %v2101_v22 }
 0x1c2   : > { %1650 = vtanh.f32 %v1013_v58  ;;  %v998_v33 = vadd.f32 %v982_v59, %v2159_v49  ;;  %v1481_v0 = vpack.c.bf16 %v1050_v48, %v1049_v61  ;;  %v1012_v20 = vmul.f32 0.7978846, %v996_v62 }
 0x1c3   : > { %v1641_v3 = vpop.eup %1640  ;;  %1479 = vmatpush3.bf16.xpose.msk.msra.mxu0 %vm2177_vm5, %v1477_v54  ;;  %v1037_v5 = vadd.f32 1.0, %v1633_v36  ;;  %v1038_v19 = vadd.f32 1.0, %v1637_v47  ;;  %v1051_v10 = vmul.f32 %v1035_v13, %v923_v23  ;;  %v1052_v1 = vmul.f32 %v1036_v2, %v924_v4 }
 0x1c4   : > { %v1643_v6 = vpop.eup %1642  ;;  %v1014_v24 = vmul.f32 0.7978846, %v998_v33  ;;  %1480 = vmatprep.subr.bf16.mxu0 %v1721_v14  ;;  %v1041_v25 = vadd.f32 1.0, %v1641_v3  ;;  %1652 = vtanh.f32 %v1012_v20  ;;  %v930_v12 = vmul.f32 0.5, %v2108_v42 }
 0x1c5   : > { %v1645_v27 = vpop.eup %1644  ;;  %v1053_v28 = vmul.f32 %v1037_v5, %v2146_v7  ;;  %v1054_v11 = vmul.f32 %v1038_v19, %v926_v38  ;;  %v1039_v29 = vadd.f32 1.0, %v1643_v6  ;;  %v1485_v30 = vpack.c.bf16 %v1052_v1, %v1051_v10 }
 0x1c6   : > { %v1647_v22 = vpop.eup %1646  ;;  %1654 = vtanh.f32 %v1014_v24  ;;  %v1042_v9 = vadd.f32 1.0, %v1645_v27  ;;  %v927_v31 = vmul.f32 0.5, %v2104_v41  ;;  %v928_v32 = vmul.f32 0.5, %v2111_v43 }
 0x1c7   : > { %v1489_v35 = vpack.c.bf16 %v1054_v11, %v1053_v28  ;;  %v1040_v23 = vadd.f32 1.0, %v1647_v22  ;;  %v1057_v36 = vmul.f32 %v1041_v25, %v929_v63  ;;  %v931_v17 = vmul.f32 0.5, %v2136_v18 }
 0x1c8   : > { %v1058_v39 = vmul.f32 %v1042_v9, %v930_v12  ;;  %v1055_v40 = vmul.f32 %v1039_v29, %v927_v31  ;;  %v933_v43 = vmul.f32 0.5, %v2142_v8  ;;  %v932_v47 = vmul.f32 0.5, %v2155_v45  ;;  %v1063_v45 = vld [vmem:[%s2272_s4 + $0x1] sm:$0x1] }
 0x1c9   : > { %v1056_v15 = vmul.f32 %v1040_v23, %v928_v32  ;;  %v934_v34 = vmul.f32 0.5, %v2159_v49  ;;  %v1065_v49 = vstv %s1064_s30 }
 0x1ca   : > { %v1497_v4 = vpack.c.bf16 %v1058_v39, %v1057_v36 }
 0x1cb   : > { %v1649_v7 = vpop.eup %1648  ;;  %1483 = vmatpush3.bf16.xpose.msk.msra.mxu0 %vm2177_vm5, %v1481_v0  ;;  %v1493_v38 = vpack.c.bf16 %v1056_v15, %v1055_v40 }
 0x1cc   : > { %v1651_v42 = vpop.eup %1650  ;;  %1484 = vmatprep.subr.bf16.mxu0 %v1721_v14  ;;  %v1043_v41 = vadd.f32 1.0, %v1649_v7 }
 0x1cd   : > { %v1045_v46 = vadd.f32 1.0, %v1651_v42 }
 0x1ce   : > { %v1653_v26 = vpop.eup %1652  ;;  %v1059_v51 = vmul.f32 %v1043_v41, %v931_v17 }
 0x1cf   : > { %v1044_v55 = vadd.f32 1.0, %v1653_v26  ;;  %v1061_v37 = vmul.f32 %v1045_v46, %v933_v43 }
 0x1d0   : > { %v1655_v50 = vpop.eup %1654 }
 0x1d1   : > { %v1046_v52 = vadd.f32 1.0, %v1655_v50  ;;  %v1060_v44 = vmul.f32 %v1044_v55, %v932_v47 }
 0x1d3   : > { %1487 = vmatpush3.bf16.xpose.msk.msra.mxu0 %vm2177_vm5, %v1485_v30  ;;  %v1062_v18 = vmul.f32 %v1046_v52, %v934_v34  ;;  %v1501_v8 = vpack.c.bf16 %v1060_v44, %v1059_v51 }
 0x1d4   : > { %1488 = vmatprep.subr.bf16.mxu0 %v1721_v14 }
 0x1d5   : > { %v1505_v53 = vpack.c.bf16 %v1062_v18, %v1061_v37 }
 0x1db   : > { %1491 = vmatpush3.bf16.xpose.msk.msra.mxu0 %vm2177_vm5, %v1489_v35 }
 0x1dc   : > { %1492 = vmatprep.subr.bf16.mxu0 %v1721_v14 }
 0x1e3   : > { %1495 = vmatpush3.bf16.xpose.msk.msra.mxu0 %vm2177_vm5, %v1493_v38 }
 0x1e4   : > { %1496 = vmatprep.subr.bf16.mxu0 %v1721_v14 }
 0x1eb   : > { %1499 = vmatpush3.bf16.xpose.msk.msra.mxu0 %vm2177_vm5, %v1497_v4 }
 0x1ec   : > { %1500 = vmatprep.subr.bf16.mxu0 %v1721_v14 }
 0x1f3   : > { %1503 = vmatpush3.bf16.xpose.msk.msra.mxu0 %vm2177_vm5, %v1501_v8 }
 0x1f4   : > { %1504 = vmatprep.subr.bf16.mxu0 %v1721_v14 }
 0x1fb   : > { %1507 = vmatpush3.bf16.xpose.msk.msra.mxu0 %vm2177_vm5, %v1505_v53 }
 0x202   : > { %1474 = vmatmul.mubr.msk.f32.vlgmr.msra.gmra.mrb[16].mxu0 %vm1066_vm4, %v1063_v45 }
 0x2d5   : > { %v1184_v16 = vpop.f32.mrb[16].mxu0 }
 0x2d6   : > { %v1185_v56 = vadd.f32 %v1184_v16, %v1065_v49  ;;  %v1475_v21 = vpop.f32.mrb[17].mxu0 }
 0x2d8   : > { %1188 = vst [vmem:[%s263_s12] sm:$0x1] %v1185_v56 }
 0x2d9   : > { %1669 = shalt.err (!%p1666_p3)
}
 0x2da   : > { %s1670_s10 = scalar_lea.hbm %s2226_s17, 16  ;;  %s1674_s27 = scalar_lea.hbm %s2274_s6, 32 }
 0x2db   : > { %p1671_p4 = scmp.ne.s32.totalorder %s2226_s17, %s1670_s10  ;;  %p1675_p9 = scmp.lt.u32.totalorder %s2226_s17, %s2274_s6 }
 0x2dc   : > { %p1676_p10 = scmp.lt.u32.totalorder %s1674_s27, %s1670_s10  ;;  %p1678_p12 = scmp.lt.u32.totalorder %s1670_s10, %s2226_s17 }
 0x2dd   : > { %p1672_p7 = pnand %p1671_p4, %p1798_p5 }
 0x2de   : > { %p1677_p11 = por %p1676_p10, %p1675_p9 }
 0x2df   : > { %p1673_p8 = pneg %p1672_p7 }
 0x2e0   : > { %p1679_p13 = por %p1678_p12, %p1677_p11 }
 0x2e2   : > { %p1680_p0 = pnand %p1679_p13, %p1673_p8 }
 0x2e4   : > { %1683 = shalt.err (!%p1680_p0)
}
 0x2e5   : > { %1508 = dma.vmem_to_hbm [thread:$0]  (%p1798_p5), %s2228_s14, 16, %s2226_s17, %s1190_s18  }
 0x2e6 PF: > { %p1514_p1 = scmp.ge.s32.totalorder %s1718_s26, 2  ;;  %s1214_s11 = sand.u32 1, %s1706_s23  }
 0x2e7   : > { %s1215_s12 = scalar_lea.sflag [#allocation4], %s1214_s11 }
 0x2e8   : > { %p1511_p2 = pnand %p1514_p1, %p1802_p6 }
 0x2ea   : > { %1701 = dma.done.wait (!%p1511_p2), %s1215_s12, 16  }
 0x2eb   : > { %1703 = vsyncadd (!%p1511_p2), %s1215_s12, 4294967280  ;;  %p17_p3 = scmp.ge.s32.totalorder %s1786_s28, 4   ;;  %s2279_s23 = smov %s1710_s24 }
 0x2ec   : > { %s2280_s24 = smov %s1714_s25  ;;  %s2281_s25 = smov %s1796_s7 }
 0x2ed   : > { %s2282_s26 = smov %s1786_s28  ;;  %19 = sbr.rel (!%p17_p3) target bundleno = 5 (0x5), region = 82 }
 0x2f4   :  { %1219 = vsyncpa [#allocation4], 1 }
 0x2f5   :  { %1221 = vsyncpa [#allocation4 + $0x1], 1 }

// kernel: tpu_custom_call.1
= control target key start
LH: loop header
LB: loop body
LE: loop exit
PB: predicated region body
PF: predicated region fallthrough
CT: control target
= control target key end

     0   :  { %s2268_s0 = inlined_call_operand.vmem [shape: bf16[256,64], index: 0, kind: input, shape index: {}]   ;;  %s2269_s1 = inlined_call_operand.vmem [shape: bf16[256,200], index: 1, kind: input, shape index: {}]   ;;  %s2270_s2 = inlined_call_operand.vmem [shape: bf16[200,32], index: 2, kind: input, shape index: {}]   ;;  %s2271_s3 = inlined_call_operand.vmem [shape: bf16[64,32], index: 3, kind: input, shape index: {}]   ;;  %s2272_s4 = inlined_call_operand.vmem [shape: f32[2,32], index: 4, kind: input, shape index: {}]   ;;  %s2273_s5 = inlined_call_operand.<no memory space> [shape: f32[1,1], index: 5, kind: input, shape index: {}]   ;;  %s2274_s6 = inlined_call_operand.hbm [shape: f32[1,256], index: 6, kind: output, shape index: {}]  }
   0x1   :  { %11 = sst [smem:[#allocation2]] %s2273_s5 }
   0x2   :  { %12 = vsyncpa [#allocation4], 0 }
   0x3   :  { %14 = vsyncpa [#allocation4 + $0x1], 0  ;;  %s1763_s23 = smov 0   ;;  %s1765_s24 = smov 0  }
   0x4   :  { %s1767_s25 = smov 0   ;;  %s1769_s26 = smov 0  }
   0x5 LB: > { %s1268_s5 = sadd.s32 4294967295, %s1718_s26   ;;  %s1269_s27 = sadd.s32 4294967294, %s1718_s26   ;;  %s1718_s26 = sphi %s1769_s26, %s2282_s26   ;;  %s1714_s25 = sphi %s1767_s25, %s2281_s25   ;;  %s1710_s24 = sphi %s1765_s24, %s2280_s24   ;;  %s1706_s23 = sphi %s1763_s23, %s2279_s23  }
   0x6   : > { %s1786_s28 = sadd.s32 1, %s1718_s26   ;;  %s163_s29 = sadd.s32 1, %s1714_s25 }
   0x7   : > { %s160_s30 = ssub.s32 %s1718_s26, %s1786_s28  ;;  %p173_p0 = scmp.ne.s32.totalorder %s1714_s25, %s1710_s24 }
   0x8   : > { %p161_p1 = scmp.eq.s32.totalorder %s160_s30, 0  ;;  %p174_p2 = scmp.eq.s32.totalorder %s1268_s5, 1 }
   0x9   : > { %p179_p3 = scmp.ne.s32.totalorder %s1710_s24, %s1706_s23  ;;  %p180_p4 = scmp.eq.s32.totalorder %s1269_s27, 1 }
   0xa   : > { %s1796_s7 = scalar_select %p161_p1, %s1714_s25, %s163_s29  }
   0xb   : > { %p1798_p5 = por %p174_p2, %p173_p0  ;;  %p1802_p6 = por %p180_p4, %p179_p3 }
   0xc   : > { %p1272_p7 = scmp.ge.s32.totalorder %s1718_s26, 1  ;;  %p229_p8 = scmp.lt.s32.totalorder %s1718_s26, 3 }
   0xe   : > { %p230_p9 = pnand %p1272_p7, %p229_p8 }
   0xf   : > { %s1808_s10 = sshll.u32 (!%p230_p9), %s1268_s5, 4  ;;  %v1551_v0 = vld [vmem:[%s2270_s2] sm:$0xff] (!%p230_p9)   ;;  %v1720_v1 = vmov (!%p230_p9), 0   ;;  %v1552_v2 = vld [vmem:[%s2270_s2 + $0x8] sm:$0xff] (!%p230_p9)   ;;  %v1553_v3 = vld [vmem:[%s2270_s2 + $0x10] sm:$0xff] (!%p230_p9)   ;;  %vm326_vm0 = vcmask (!%p230_p9), 523264  }
  0x10   : > { %233 = sbr.rel (%p230_p9) target bundleno = 742 (0x2e6), region = 44  ;;  %p265_p10 = scmp.lt.s32.totalorder (!%p230_p9), %s1808_s10, 31  ;;  %802 = vmatprep.subr.bf16.mxu1 (!%p230_p9), %v1720_v1  ;;  %v1554_v18 = vld [vmem:[%s2270_s2 + $0x18] sm:$0xff] (!%p230_p9)   ;;  %v1555_v23 = vld [vmem:[%s2270_s2 + $0x20] sm:$0xff] (!%p230_p9)   ;;  %vm773_vm1 = vcmask (!%p230_p9), 588800   ;;  %v1556_v36 = vld [vmem:[%s2270_s2 + $0x28] sm:$0xff] (!%p230_p9)  }
  0x11   : > { %803 = vmatpush1.bf16.msra.mxu1 (!%p230_p9), %v1551_v0  ;;  %v1557_v40 = vld [vmem:[%s2270_s2 + $0x30] sm:$0xff] (!%p230_p9)   ;;  %v1558_v47 = vld [vmem:[%s2270_s2 + $0x38] sm:$0xff] (!%p230_p9)   ;;  %v1559_v60 = vld [vmem:[%s2270_s2 + $0x40] sm:$0xff] (!%p230_p9)   ;;  %vm798_vm2 = vcmask (!%p230_p9), 1043456   ;;  %vm1722_vm3 = vmmov (!%p230_p9), 0   ;;  %vm1066_vm4 = vcmask (!%p230_p9), 261120   ;;  %s2226_s17 = scalar_lea.hbm (!%p230_p9), %s2274_s6, %s1808_s10 }
  0x12   : > { %804 = vmatprep.subr.bf16.mxu1 (!%p230_p9), %v1720_v1  ;;  %v1570_v61 = vld [vmem:[%s2271_s3] sm:$0xff] (!%p230_p9)   ;;  %vm2177_vm5 = vmpackc.low (!%p230_p9), %vm1066_vm4, %vm1066_vm4  ;;  %s1064_s30 = sld [smem:[#allocation2]] (!%p230_p9)  ;;  %s262_s11 = sand.u32 (!%p230_p9), 1, %s1710_s24  }
  0x13   : > { %1417 = vmatprep.subr.bf16.mxu0 (!%p230_p9), %v1570_v61  ;;  %s263_s12 = scalar_lea.vmem (!%p230_p9), [#allocation3], %s262_s11  ;;  %s1190_s18 = scalar_lea.sflag (!%p230_p9), [#allocation4], %s262_s11 }
  0x14   : > { %1418 = vmatpush3.bf16.msra.mxu0 (!%p230_p9), %v1570_v61  ;;  %s1202_s14 = sshll.u32 (!%p230_p9), %s263_s12, 4  ;;  %s1724_s20 = smov (!%p230_p9), [#allocation3]   ;;  %s2228_s14 = int_to_ptr.vmem [resolvable:$true] %s1202_s14 }
  0x15   : > { %805 = vmatpush1.bf16.msra.mxu1 (!%p230_p9), %v1552_v2  ;;  %s1656_s19 = scalar_lea.vmem (!%p230_p9), %s2228_s14, 16 }
  0x16   : > { %806 = vmatprep.subr.bf16.mxu1 (!%p230_p9), %v1720_v1  ;;  %p1657_p11 = scmp.ne.s32.totalorder (!%p230_p9), %s2228_s14, %s1656_s19 }
  0x17   : > { %s1819_s15 = scalar_select %p265_p10, %s1808_s10, 31 }
  0x18   : > { %p1658_p12 = pnand %p1657_p11, %p1798_p5 }
  0x19   : > { %s1274_s16 = sshll.u32 %s1819_s15, 2  ;;  %807 = vmatpush1.bf16.msra.mxu1 %v1553_v3  ;;  %s1348_s27 = sshll.u32 %s1819_s15, 3  ;;  %v1560_v3 = vld [vmem:[%s2270_s2 + $0x48] sm:$0xff]  }
  0x1a   : > { %s1829_s21 = scalar_lea.vmem %s2268_s0, %s1274_s16  ;;  %808 = vmatprep.subr.bf16.mxu1 %v1720_v1  ;;  %s1879_s13 = scalar_lea.vmem %s2269_s1, %s1348_s27 }
  0x1b   : > { %v1381_v4 = vld [vmem:[%s1829_s21 + $0x8] sm:$0xff]   ;;  %v1350_v5 = vld [vmem:[%s1829_s21] sm:$0xff]   ;;  %v1382_v6 = vld [vmem:[%s1829_s21 + $0x10] sm:$0xff]   ;;  %p1659_p13 = pneg %p1658_p12 }
  0x1c   : > { %v1835_v7 = vunpack.c.l.bf16 %v1381_v4  ;;  %v1837_v8 = vunpack.c.l.bf16 %v1350_v5  ;;  %v1839_v9 = vunpack.c.h.bf16 %v1381_v4  ;;  %v1841_v10 = vunpack.c.h.bf16 %v1350_v5  ;;  %v1383_v13 = vld [vmem:[%s1829_s21 + $0x18] sm:$0xff]   ;;  %v1384_v28 = vld [vmem:[%s1829_s21 + $0x20] sm:$0xff]   ;;  %v1385_v35 = vld [vmem:[%s1829_s21 + $0x28] sm:$0xff]  }
  0x1d   : > { %v1843_v11 = vunpack.c.h.bf16 %v1382_v6  ;;  %v1845_v12 = vunpack.c.l.bf16 %v1382_v6  ;;  %v1863_v21 = vunpack.c.h.bf16 %v1383_v13  ;;  %v1865_v22 = vunpack.c.l.bf16 %v1383_v13  ;;  %809 = vmatpush1.bf16.msra.mxu1 %v1554_v18  ;;  %v1566_v37 = vld [vmem:[%s1879_s13 + $0x4] ss:$8 sps:$4 sm:$0xff]   ;;  %v1386_v39 = vld [vmem:[%s1829_s21 + $0x30] sm:$0xff]   ;;  %v1387_v46 = vld [vmem:[%s1829_s21 + $0x38] sm:$0xff]   ;;  %s1660_s21 = sshll.u32 %s1724_s20, 4  ;;  %s1661_s21 = int_to_ptr.vmem [resolvable:$false] %s1660_s21 }
  0x1e   : > { %v312_v14 = vmul.f32 %v1835_v7, %v1835_v7  ;;  %v310_v15 = vmul.f32 %v1837_v8, %v1837_v8  ;;  %v313_v16 = vmul.f32 %v1839_v9, %v1839_v9  ;;  %v311_v17 = vmul.f32 %v1841_v10, %v1841_v10  ;;  %810 = vmatprep.subr.bf16.mxu1 %v1720_v1  ;;  %v1574_v4 = vld [vmem:[%s2271_s3 + $0x8] sm:$0xff]   ;;  %v1561_v13 = vld [vmem:[%s2270_s2 + $0x50] sm:$0xff]   ;;  %s1662_s22 = scalar_lea.vmem %s1661_s21, 32  ;;  %p1663_p0 = scmp.lt.s32.totalorder %s2228_s14, %s1661_s21 }
  0x1f   : > { %v315_v26 = vmul.f32 %v1843_v11, %v1843_v11  ;;  %v314_v27 = vmul.f32 %v1845_v12, %v1845_v12  ;;  %v317_v29 = vmul.f32 %v1863_v21, %v1863_v21  ;;  %v316_v30 = vmul.f32 %v1865_v22, %v1865_v22  ;;  %1319 = vmatprep.mubr.msk.bf16.mxu1 %vm773_vm1, %v1566_v37  ;;  %p1664_p1 = scmp.lt.s32.totalorder %s1662_s22, %s1656_s19 }
  0x20   : > { %v333_v19 = vsel %vm326_vm0, %v312_v14, 0.0  ;;  %v327_v20 = vsel %vm326_vm0, %v310_v15, 0.0  ;;  %v336_v24 = vsel %vm326_vm0, %v313_v16, 0.0  ;;  %v330_v25 = vsel %vm326_vm0, %v311_v17, 0.0  ;;  %1419 = vmatprep.subr.bf16.mxu0 %v1574_v4  ;;  %v1575_v14 = vld [vmem:[%s2271_s3 + $0x10] sm:$0xff]   ;;  %v1562_v15 = vld [vmem:[%s2270_s2 + $0x58] sm:$0xff]  }
  0x21   : > { %334 = vadd.xlane.f32.xlu1 %v333_v19  ;;  %328 = vadd.xlane.f32.xlu0 %v327_v20  ;;  %v342_v31 = vsel %vm326_vm0, %v315_v26, 0.0  ;;  %v339_v32 = vsel %vm326_vm0, %v314_v27, 0.0  ;;  %v1889_v33 = vunpack.c.h.bf16 %v1384_v28  ;;  %v1891_v34 = vunpack.c.l.bf16 %v1384_v28  ;;  %v1563_v16 = vld [vmem:[%s2270_s2 + $0x60] ss:$0 sps:$4 sm:$0xff]   ;;  %v1579_v17 = vld [vmem:[%s2271_s3 + $0x18] sm:$0xff]   ;;  %p1665_p2 = por %p1664_p1, %p1663_p0 }
  0x22   : > { %811 = vmatpush1.bf16.msra.mxu1 %v1555_v23  ;;  %v348_v38 = vsel %vm326_vm0, %v317_v29, 0.0  ;;  %v345_v41 = vsel %vm326_vm0, %v316_v30, 0.0  ;;  %v1910_v44 = vunpack.c.h.bf16 %v1385_v35  ;;  %v1912_v45 = vunpack.c.l.bf16 %v1385_v35  ;;  %1420 = vmatpush3.bf16.msra.mxu0 %v1574_v4  ;;  %v1564_v19 = vld [vmem:[%s1879_s13] ss:$8 sps:$4 sm:$0xff]   ;;  %v1567_v20 = vld [vmem:[%s1879_s13 + $0x14] ss:$8 sps:$4 sm:$0xff]  }
  0x23   : > { %812 = vmatprep.subr.bf16.mxu1 %v1720_v1  ;;  %v319_v42 = vmul.f32 %v1889_v33, %v1889_v33  ;;  %v318_v43 = vmul.f32 %v1891_v34, %v1891_v34  ;;  %v1919_v48 = vunpack.c.h.bf16 %v1386_v39  ;;  %v1921_v49 = vunpack.c.l.bf16 %v1386_v39  ;;  %1421 = vmatprep.subr.bf16.mxu0 %v1575_v14  ;;  %v1569_v23 = vld [vmem:[%s1879_s13 + $0x10] ss:$8 sps:$4 sm:$0xff]   ;;  %v1580_v27 = vld [vmem:[%s1879_s13 + $0x44] ss:$8 sps:$4 sm:$0xff]   ;;  %v1582_v28 = vld [vmem:[%s1879_s13 + $0x40] ss:$8 sps:$4 sm:$0xff]   ;;  %p1666_p3 = pnand %p1665_p2, %p1659_p13 }
  0x24   : > { %v321_v52 = vmul.f32 %v1910_v44, %v1910_v44  ;;  %v320_v53 = vmul.f32 %v1912_v45, %v1912_v45  ;;  %v1930_v54 = vunpack.c.h.bf16 %v1387_v46  ;;  %v1932_v55 = vunpack.c.l.bf16 %v1387_v46  ;;  %v1578_v26 = vld [vmem:[%s1879_s13 + $0x30] ss:$8 sps:$4 sm:$0xff]   ;;  %v1583_v29 = vld [vmem:[%s1879_s13 + $0x54] ss:$8 sps:$4 sm:$0xff]  }
  0x25   : > { %337 = vadd.xlane.f32.xlu1 %v336_v24  ;;  %331 = vadd.xlane.f32.xlu0 %v330_v25  ;;  %v354_v50 = vsel %vm326_vm0, %v319_v42, 0.0  ;;  %v351_v51 = vsel %vm326_vm0, %v318_v43, 0.0  ;;  %v323_v58 = vmul.f32 %v1919_v48, %v1919_v48  ;;  %v322_v59 = vmul.f32 %v1921_v49, %v1921_v49  ;;  %v1571_v24 = vld [vmem:[%s1879_s13 + $0x24] ss:$8 sps:$4 sm:$0xff]   ;;  %v1576_v25 = vld [vmem:[%s1879_s13 + $0x34] ss:$8 sps:$4 sm:$0xff]  }
  0x26   : > { %813 = vmatpush1.bf16.msra.mxu1 %v1556_v36  ;;  %v360_v56 = vsel %vm326_vm0, %v321_v52, 0.0  ;;  %v357_v57 = vsel %vm326_vm0, %v320_v53, 0.0  ;;  %v325_v0 = vmul.f32 %v1930_v54, %v1930_v54  ;;  %v324_v2 = vmul.f32 %v1932_v55, %v1932_v55  ;;  %1422 = vmatpush3.bf16.msra.mxu0 %v1575_v14  ;;  %v1585_v30 = vld [vmem:[%s1879_s13 + $0x50] ss:$8 sps:$4 sm:$0xff]   ;;  %v1589_v35 = vld [vmem:[%s1879_s13 + $0x74] ss:$8 sps:$4 sm:$0xff]  }
  0x27   : > { %814 = vmatprep.subr.bf16.mxu1 %v1720_v1  ;;  %v366_v62 = vsel %vm326_vm0, %v323_v58, 0.0  ;;  %v363_v63 = vsel %vm326_vm0, %v322_v59, 0.0  ;;  %1423 = vmatprep.subr.bf16.mxu0 %v1579_v17  ;;  %v800_v18 = vsel %vm798_vm2, %v1563_v16, 0  ;;  %v1591_v36 = vld [vmem:[%s1879_s13 + $0x70] ss:$8 sps:$4 sm:$0xff]  }
  0x28   : > { %v372_v5 = vsel %vm326_vm0, %v325_v0, 0.0  ;;  %v369_v6 = vsel %vm326_vm0, %v324_v2, 0.0 }
  0x29   : > { %343 = vadd.xlane.f32.xlu1 %v342_v31  ;;  %340 = vadd.xlane.f32.xlu0 %v339_v32  ;;  %v1586_v31 = vld [vmem:[%s1879_s13 + $0x64] ss:$8 sps:$4 sm:$0xff]   ;;  %v1588_v32 = vld [vmem:[%s1879_s13 + $0x60] ss:$8 sps:$4 sm:$0xff]  }
  0x2a   : > { %815 = vmatpush1.bf16.msra.mxu1 %v1557_v40  ;;  %1424 = vmatpush3.bf16.msra.mxu0 %v1579_v17 }
  0x2b   : > { %816 = vmatprep.subr.bf16.mxu1 %v1720_v1 }
  0x2d   : > { %349 = vadd.xlane.f32.xlu1 %v348_v38  ;;  %346 = vadd.xlane.f32.xlu0 %v345_v41 }
  0x2e   : > { %817 = vmatpush1.bf16.msra.mxu1 %v1558_v47 }
  0x2f   : > { %818 = vmatprep.subr.bf16.mxu1 %v1720_v1 }
  0x31   : > { %355 = vadd.xlane.f32.xlu1 %v354_v50  ;;  %352 = vadd.xlane.f32.xlu0 %v351_v51 }
  0x32   : > { %819 = vmatpush1.bf16.msra.mxu1 %v1559_v60 }
  0x33   : > { %820 = vmatprep.subr.bf16.mxu1 %v1720_v1 }
  0x35   : > { %361 = vadd.xlane.f32.xlu1 %v360_v56  ;;  %358 = vadd.xlane.f32.xlu0 %v357_v57 }
  0x36   : > { %821 = vmatpush1.bf16.msra.mxu1 %v1560_v3 }
  0x37   : > { %822 = vmatprep.subr.bf16.mxu1 %v1720_v1 }
  0x39   : > { %367 = vadd.xlane.f32.xlu1 %v366_v62  ;;  %364 = vadd.xlane.f32.xlu0 %v363_v63 }
  0x3a   : > { %823 = vmatpush1.bf16.msra.mxu1 %v1561_v13 }
  0x3b   : > { %824 = vmatprep.subr.bf16.mxu1 %v1720_v1 }
  0x3d   : > { %373 = vadd.xlane.f32.xlu1 %v372_v5  ;;  %370 = vadd.xlane.f32.xlu0 %v369_v6 }
  0x3e   : > { %825 = vmatpush1.bf16.msra.mxu1 %v1562_v15 }
  0x3f   : > { %826 = vmatprep.subr.bf16.mxu1 %v1720_v1  ;;  %v1573_v1 = vld [vmem:[%s1879_s13 + $0x20] ss:$8 sps:$4 sm:$0xff]  }
  0x42   : > { %827 = vmatpush1.bf16.msra.mxu1 %v800_v18 }
  0x45   : > { %835 = vmatmul.mubr.bf16.vlgmr.msra.gmra.mrb[0].mxu1 %v1564_v19 }
  0x46   : > { %1320 = vmatprep.mubr.msk.bf16.mxu1 %vm773_vm1, %v1567_v20 }
  0x4d   : > { %843 = vmatmul.mubr.bf16.gmra.mrb[4].mxu1 %v1569_v23 }
  0x4e   : > { %1321 = vmatprep.mubr.msk.bf16.mxu1 %vm773_vm1, %v1571_v24 }
  0x55   : > { %851 = vmatmul.mubr.bf16.gmra.mrb[8].mxu1 %v1573_v1 }
  0x56   : > { %1322 = vmatprep.mubr.msk.bf16.mxu1 %vm773_vm1, %v1576_v25 }
  0x5d   : > { %859 = vmatmul.mubr.bf16.gmra.mrb[12].mxu1 %v1578_v26 }
  0x5e   : > { %1323 = vmatprep.mubr.msk.bf16.mxu1 %vm773_vm1, %v1580_v27 }
  0x65   : > { %867 = vmatmul.mubr.bf16.gmra.mrb[16].mxu1 %v1582_v28 }
  0x66   : > { %1324 = vmatprep.mubr.msk.bf16.mxu1 %vm773_vm1, %v1583_v29 }
  0x6d   : > { %875 = vmatmul.mubr.bf16.gmra.mrb[20].mxu1 %v1585_v30 }
  0x6e   : > { %1325 = vmatprep.mubr.msk.bf16.mxu1 %vm773_vm1, %v1586_v31 }
  0x75   : > { %883 = vmatmul.mubr.bf16.gmra.mrb[24].mxu1 %v1588_v32 }
  0x76   : > { %1326 = vmatprep.mubr.msk.bf16.mxu1 %vm773_vm1, %v1589_v35 }
  0x7d   : > { %891 = vmatmul.mubr.bf16.gmra.mrb[28].mxu1 %v1591_v36 }
  0xae   : > { %v335_v37 = vpop.xlane.xlu1 %334  ;;  %v329_v38 = vpop.xlane.xlu0 %328 }
  0xaf   : > { %v377_v39 = vmax.f32 %v335_v37, 1e-24  ;;  %v375_v40 = vmax.f32 %v329_v38, 1e-24 }
  0xb1   : > { %1592 = vrsqrt.f32 %v377_v39 }
  0xb2   : > { %v338_v41 = vpop.xlane.xlu1 %337  ;;  %v332_v42 = vpop.xlane.xlu0 %331  ;;  %1594 = vrsqrt.f32 %v375_v40 }
  0xb3   : > { %v378_v43 = vmax.f32 %v338_v41, 1e-24  ;;  %v376_v46 = vmax.f32 %v332_v42, 1e-24 }
  0xb5   : > { %1596 = vrsqrt.f32 %v378_v43 }
  0xb6   : > { %1598 = vrsqrt.f32 %v376_v46  ;;  %v344_v47 = vpop.xlane.xlu1 %343  ;;  %v341_v50 = vpop.xlane.xlu0 %340 }
  0xb7   : > { %v380_v51 = vmax.f32 %v344_v47, 1e-24  ;;  %v379_v52 = vmax.f32 %v341_v50, 1e-24 }
  0xb9   : > { %1600 = vrsqrt.f32 %v380_v51 }
  0xba   : > { %1602 = vrsqrt.f32 %v379_v52  ;;  %v350_v53 = vpop.xlane.xlu1 %349  ;;  %v347_v56 = vpop.xlane.xlu0 %346 }
  0xbb   : > { %v382_v57 = vmax.f32 %v350_v53, 1e-24  ;;  %v381_v58 = vmax.f32 %v347_v56, 1e-24  ;;  %v1593_v59 = vpop.eup %1592 }
  0xbc   : > { %v1595_v60 = vpop.eup %1594  ;;  %v409_v4 = vmul.f32 %v1593_v59, %v1835_v7 }
  0xbd   : > { %1604 = vrsqrt.f32 %v382_v57  ;;  %v407_v6 = vmul.f32 %v1595_v60, %v1837_v8 }
  0xbe   : > { %1606 = vrsqrt.f32 %v381_v58  ;;  %v356_v61 = vpop.xlane.xlu1 %355  ;;  %v353_v62 = vpop.xlane.xlu0 %352 }
  0xbf   : > { %v1597_v63 = vpop.eup %1596  ;;  %v384_v0 = vmax.f32 %v356_v61, 1e-24  ;;  %v383_v2 = vmax.f32 %v353_v62, 1e-24 }
  0xc0   : > { %v1599_v3 = vpop.eup %1598  ;;  %v410_v5 = vmul.f32 %v1597_v63, %v1839_v9 }
  0xc1   : > { %1608 = vrsqrt.f32 %v384_v0  ;;  %v408_v13 = vmul.f32 %v1599_v3, %v1841_v10 }
  0xc2   : > { %1610 = vrsqrt.f32 %v383_v2  ;;  %v362_v14 = vpop.xlane.xlu1 %361  ;;  %v359_v15 = vpop.xlane.xlu0 %358  ;;  %v466_v16 = vpack.c.bf16 %v410_v5, %v409_v4 }
  0xc3   : > { %v1601_v17 = vpop.eup %1600  ;;  %v386_v18 = vmax.f32 %v362_v14, 1e-24  ;;  %v385_v19 = vmax.f32 %v359_v15, 1e-24  ;;  %v465_v20 = vpack.c.bf16 %v408_v13, %v407_v6  ;;  %v1721_v14 = vmov 0.0|0.0  }
  0xc4   : > { %v1603_v23 = vpop.eup %1602  ;;  %v412_v24 = vmul.f32 %v1601_v17, %v1843_v11  ;;  %1476 = vmatprep.subr.bf16.mxu0 %v1721_v14 }
  0xc5   : > { %1612 = vrsqrt.f32 %v386_v18  ;;  %1425 = vmatprep.mubr.msk.bf16.mxu0 %vm326_vm0, %v465_v20  ;;  %v411_v7 = vmul.f32 %v1603_v23, %v1845_v12 }
  0xc6   : > { %1614 = vrsqrt.f32 %v385_v19  ;;  %1426 = vmatmul.mubr.msk.bf16.vlgmr.msra.gmra.mrb[0].mxu0 %vm326_vm0, %v466_v16  ;;  %v368_v8 = vpop.xlane.xlu1 %367  ;;  %v365_v9 = vpop.xlane.xlu0 %364 }
  0xc7   : > { %v1605_v10 = vpop.eup %1604  ;;  %v388_v1 = vmax.f32 %v368_v8, 1e-24  ;;  %v387_v25 = vmax.f32 %v365_v9, 1e-24  ;;  %v467_v26 = vpack.c.bf16 %v412_v24, %v411_v7 }
  0xc8   : > { %v1607_v27 = vpop.eup %1606  ;;  %v414_v28 = vmul.f32 %v1605_v10, %v1863_v21 }
  0xc9   : > { %1616 = vrsqrt.f32 %v388_v1  ;;  %1429 = vmatprep.mubr.msk.bf16.mxu0 %vm326_vm0, %v467_v26  ;;  %v413_v11 = vmul.f32 %v1607_v27, %v1865_v22  ;;  %v1723_v1 = vmov 0.0   ;;  %v2048_v26 = vld [vmem:[%s2272_s4] ss:$0 sm:$0xff] }
  0xca   : > { %1618 = vrsqrt.f32 %v387_v25  ;;  %v374_v29 = vpop.xlane.xlu1 %373  ;;  %v371_v12 = vpop.xlane.xlu0 %370 }
  0xcb   : > { %v1609_v30 = vpop.eup %1608  ;;  %v390_v31 = vmax.f32 %v374_v29, 1e-24  ;;  %v389_v32 = vmax.f32 %v371_v12, 1e-24  ;;  %v468_v35 = vpack.c.bf16 %v414_v28, %v413_v11 }
  0xcc   : > { %v1611_v36 = vpop.eup %1610  ;;  %v416_v37 = vmul.f32 %v1609_v30, %v1889_v33 }
  0xcd   : > { %1620 = vrsqrt.f32 %v390_v31  ;;  %v415_v38 = vmul.f32 %v1611_v36, %v1891_v34 }
  0xce   : > { %1622 = vrsqrt.f32 %v389_v32  ;;  %1430 = vmatmul.mubr.msk.bf16.gmra.mrb[4].mxu0 %vm326_vm0, %v468_v35 }
  0xcf   : > { %v1613_v21 = vpop.eup %1612  ;;  %v469_v39 = vpack.c.bf16 %v416_v37, %v415_v38 }
  0xd0   : > { %v1615_v40 = vpop.eup %1614  ;;  %v418_v22 = vmul.f32 %v1613_v21, %v1910_v44 }
  0xd1   : > { %1433 = vmatprep.mubr.msk.bf16.mxu0 %vm326_vm0, %v469_v39  ;;  %v417_v41 = vmul.f32 %v1615_v40, %v1912_v45 }
  0xd3   : > { %v1617_v42 = vpop.eup %1616  ;;  %v470_v43 = vpack.c.bf16 %v418_v22, %v417_v41 }
  0xd4   : > { %v1619_v46 = vpop.eup %1618  ;;  %v420_v33 = vmul.f32 %v1617_v42, %v1919_v48 }
  0xd5   : > { %v419_v47 = vmul.f32 %v1619_v46, %v1921_v49 }
  0xd6   : > { %1434 = vmatmul.mubr.msk.bf16.gmra.mrb[8].mxu0 %vm326_vm0, %v470_v43 }
  0xd7   : > { %v1621_v34 = vpop.eup %1620  ;;  %v471_v50 = vpack.c.bf16 %v420_v33, %v419_v47 }
  0xd8   : > { %v1623_v51 = vpop.eup %1622  ;;  %v422_v52 = vmul.f32 %v1621_v34, %v1930_v54 }
  0xd9   : > { %1437 = vmatprep.mubr.msk.bf16.mxu0 %vm326_vm0, %v471_v50  ;;  %v421_v44 = vmul.f32 %v1623_v51, %v1932_v55 }
  0xdb   : > { %v472_v53 = vpack.c.bf16 %v422_v52, %v421_v44 }
  0xde   : > { %1438 = vmatmul.mubr.msk.bf16.gmra.mrb[12].mxu0 %vm326_vm0, %v472_v53 }
  0xdf   : > { %1473 = vmatprep.mubr.msk.f32.mxu0 %vm1722_vm3, %v1723_v1 }
 0x118   : > { %v836_v45 = vpop.f32.mrb[0].mxu1 }
 0x119   : > { %v838_v56 = vpop.f32.mrb[1].mxu1 }
 0x11a   : > { %v839_v57 = vpop.f32.mrb[2].mxu1 }
 0x11b   : > { %v841_v48 = vpop.f32.mrb[3].mxu1 }
 0x120   : > { %v844_v58 = vpop.f32.mrb[4].mxu1 }
 0x121   : > { %v846_v49 = vpop.f32.mrb[5].mxu1 }
 0x122   : > { %v847_v59 = vpop.f32.mrb[6].mxu1 }
 0x123   : > { %v849_v60 = vpop.f32.mrb[7].mxu1 }
 0x128   : > { %v852_v61 = vpop.f32.mrb[8].mxu1 }
 0x129   : > { %v854_v62 = vpop.f32.mrb[9].mxu1 }
 0x12a   : > { %v2026_v63 = vpop.f32.mrb[10].mxu1 }
 0x12b   : > { %v857_v54 = vpop.f32.mrb[11].mxu1 }
 0x130   : > { %v860_v0 = vpop.f32.mrb[12].mxu1 }
 0x131   : > { %v862_v2 = vpop.f32.mrb[13].mxu1 }
 0x132   : > { %v863_v3 = vpop.f32.mrb[14].mxu1 }
 0x133   : > { %v865_v55 = vpop.f32.mrb[15].mxu1 }
 0x138   : > { %v2028_v4 = vpop.f32.mrb[16].mxu1 }
 0x139   : > { %v870_v5 = vpop.f32.mrb[17].mxu1 }
 0x13a   : > { %v2030_v6 = vpop.f32.mrb[18].mxu1 }
 0x13b   : > { %v873_v13 = vpop.f32.mrb[19].mxu1 }
 0x140   : > { %v2033_v15 = vpop.f32.mrb[20].mxu1 }
 0x141   : > { %v878_v16 = vpop.f32.mrb[21].mxu1 }
 0x142   : > { %v2035_v17 = vpop.f32.mrb[22].mxu1 }
 0x143   : > { %v881_v18 = vpop.f32.mrb[23].mxu1 }
 0x148   : > { %v2037_v19 = vpop.f32.mrb[24].mxu1 }
 0x149   : > { %v886_v20 = vpop.f32.mrb[25].mxu1 }
 0x14a   : > { %v2039_v23 = vpop.f32.mrb[26].mxu1 }
 0x14b   : > { %v889_v24 = vpop.f32.mrb[27].mxu1 }
 0x150   : > { %v2041_v7 = vpop.f32.mrb[28].mxu1 }
 0x151   : > { %v894_v8 = vpop.f32.mrb[29].mxu1 }
 0x152   : > { %v2043_v9 = vpop.f32.mrb[30].mxu1 }
 0x153   : > { %v897_v10 = vpop.f32.mrb[31].mxu1 }
 0x199   : > { %v1427_v25 = vpop.f32.mrb[0].mxu0 }
 0x19a   : > { %v845_v27 = vadd.f32 %v1427_v25, %v844_v58  ;;  %v563_v28 = vpop.f32.mrb[1].mxu0 }
 0x19b   : > { %v837_v11 = vadd.f32 %v836_v45, %v563_v28  ;;  %v1428_v29 = vpop.f32.mrb[2].mxu0 }
 0x19c   : > { %v905_v12 = vadd.f32 %v2048_v26, %v845_v27  ;;  %v848_v30 = vadd.f32 %v1428_v29, %v847_v59  ;;  %v566_v31 = vpop.f32.mrb[3].mxu0 }
 0x19d   : > { %v903_v32 = vadd.f32 %v2048_v26, %v837_v11  ;;  %v840_v35 = vadd.f32 %v839_v57, %v566_v31 }
 0x19e   : > { %v937_v36 = vmul.f32 0.044715, %v905_v12  ;;  %v2053_v37 = vadd.f32 %v2048_v26, %v848_v30  ;;  %v2079_v5 = vmul.f32 0.5, %v905_v12 }
 0x19f   : > { %v935_v38 = vmul.f32 0.044715, %v903_v32  ;;  %v2056_v21 = vadd.f32 %v2048_v26, %v840_v35  ;;  %v2081_v13 = vmul.f32 0.5, %v903_v32 }
 0x1a0   : > { %v953_v39 = vmul.f32 %v937_v36, %v905_v12  ;;  %v938_v40 = vmul.f32 0.044715, %v2053_v37 }
 0x1a1   : > { %v951_v22 = vmul.f32 %v935_v38, %v903_v32  ;;  %v936_v41 = vmul.f32 0.044715, %v2056_v21  ;;  %v1431_v42 = vpop.f32.mrb[4].mxu0 }
 0x1a2   : > { %v969_v43 = vmul.f32 %v953_v39, %v905_v12  ;;  %v954_v46 = vmul.f32 %v938_v40, %v2053_v37  ;;  %v861_v33 = vadd.f32 %v1431_v42, %v860_v0  ;;  %v579_v47 = vpop.f32.mrb[5].mxu0 }
 0x1a3   : > { %v967_v34 = vmul.f32 %v951_v22, %v903_v32  ;;  %v952_v50 = vmul.f32 %v936_v41, %v2056_v21  ;;  %v853_v51 = vadd.f32 %v852_v61, %v579_v47  ;;  %v1432_v52 = vpop.f32.mrb[6].mxu0 }
 0x1a4   : > { %v985_v44 = vadd.f32 %v969_v43, %v905_v12  ;;  %v970_v53 = vmul.f32 %v954_v46, %v2053_v37  ;;  %v2064_v45 = vadd.f32 %v2048_v26, %v861_v33  ;;  %v864_v56 = vadd.f32 %v1432_v52, %v863_v3  ;;  %v582_v57 = vpop.f32.mrb[7].mxu0 }
 0x1a5   : > { %v983_v48 = vadd.f32 %v967_v34, %v903_v32  ;;  %v968_v58 = vmul.f32 %v952_v50, %v2056_v21  ;;  %v2068_v49 = vadd.f32 %v2048_v26, %v853_v51  ;;  %v856_v59 = vadd.f32 %v2026_v63, %v582_v57 }
 0x1a6   : > { %v1001_v60 = vmul.f32 0.7978846, %v985_v44  ;;  %v986_v61 = vadd.f32 %v970_v53, %v2053_v37  ;;  %v941_v62 = vmul.f32 0.044715, %v2064_v45  ;;  %v2077_v55 = vadd.f32 %v2048_v26, %v864_v56 }
 0x1a7   : > { %v999_v54 = vmul.f32 0.7978846, %v983_v48  ;;  %v984_v0 = vadd.f32 %v968_v58, %v2056_v21  ;;  %v939_v2 = vmul.f32 0.044715, %v2068_v49  ;;  %v2085_v16 = vadd.f32 %v2048_v26, %v856_v59 }
 0x1a8   : > { %v957_v3 = vmul.f32 %v941_v62, %v2064_v45  ;;  %1624 = vtanh.f32 %v1001_v60  ;;  %v1002_v20 = vmul.f32 0.7978846, %v986_v61  ;;  %v942_v8 = vmul.f32 0.044715, %v2077_v55 }
 0x1a9   : > { %v955_v63 = vmul.f32 %v939_v2, %v2068_v49  ;;  %v1435_v18 = vpop.f32.mrb[8].mxu0  ;;  %1626 = vtanh.f32 %v999_v54  ;;  %v1000_v1 = vmul.f32 0.7978846, %v984_v0  ;;  %v940_v27 = vmul.f32 0.044715, %v2085_v16 }
 0x1aa   : > { %v973_v24 = vmul.f32 %v957_v3, %v2064_v45  ;;  %v595_v10 = vpop.f32.mrb[9].mxu0  ;;  %v958_v29 = vmul.f32 %v942_v8, %v2077_v55  ;;  %v877_v12 = vadd.f32 %v1435_v18, %v2033_v15  ;;  %1628 = vtanh.f32 %v1002_v20 }
 0x1ab   : > { %v971_v25 = vmul.f32 %v955_v63, %v2068_v49  ;;  %v1436_v28 = vpop.f32.mrb[10].mxu0  ;;  %v869_v30 = vadd.f32 %v2028_v4, %v595_v10  ;;  %v956_v35 = vmul.f32 %v940_v27, %v2085_v16  ;;  %v2119_v33 = vmul.f32 0.5, %v2056_v21 }
 0x1ac   : > { %v989_v11 = vadd.f32 %v973_v24, %v2064_v45  ;;  %v598_v31 = vpop.f32.mrb[11].mxu0  ;;  %v880_v36 = vadd.f32 %v1436_v28, %v2035_v17  ;;  %v974_v40 = vmul.f32 %v958_v29, %v2077_v55  ;;  %v2101_v22 = vadd.f32 %v2048_v26, %v877_v12 }
 0x1ad   : > { %v987_v32 = vadd.f32 %v971_v25, %v2068_v49  ;;  %v872_v38 = vadd.f32 %v2030_v6, %v598_v31  ;;  %v2104_v41 = vadd.f32 %v2048_v26, %v869_v30  ;;  %v972_v4 = vmul.f32 %v956_v35, %v2085_v16 }
 0x1ae   : > { %v1005_v39 = vmul.f32 0.7978846, %v989_v11  ;;  %v2108_v42 = vadd.f32 %v2048_v26, %v880_v36  ;;  %v2114_v6 = vmul.f32 0.5, %v2053_v37  ;;  %v990_v17 = vadd.f32 %v974_v40, %v2077_v55 }
 0x1af   : > { %v1003_v15 = vmul.f32 0.7978846, %v987_v32  ;;  %v2111_v43 = vadd.f32 %v2048_v26, %v872_v38  ;;  %v945_v46 = vmul.f32 0.044715, %v2101_v22  ;;  %1630 = vtanh.f32 %v1000_v1 }
 0x1b0   : > { %v988_v47 = vadd.f32 %v972_v4, %v2085_v16  ;;  %v943_v34 = vmul.f32 0.044715, %v2104_v41  ;;  %1632 = vtanh.f32 %v1005_v39  ;;  %v1006_v51 = vmul.f32 0.7978846, %v990_v17 }
 0x1b1   : > { %v1439_v50 = vpop.f32.mrb[12].mxu0  ;;  %v961_v52 = vmul.f32 %v945_v46, %v2101_v22  ;;  %v946_v37 = vmul.f32 0.044715, %v2108_v42  ;;  %1634 = vtanh.f32 %v1003_v15  ;;  %v944_v21 = vmul.f32 0.044715, %v2111_v43 }
 0x1b2   : > { %v611_v44 = vpop.f32.mrb[13].mxu0  ;;  %v1004_v53 = vmul.f32 0.7978846, %v988_v47  ;;  %v959_v56 = vmul.f32 %v943_v34, %v2104_v41  ;;  %v1625_v48 = vpop.eup %1624  ;;  %1636 = vtanh.f32 %v1006_v51  ;;  %v893_v2 = vadd.f32 %v1439_v50, %v2041_v7 }
 0x1b3   : > { %v1440_v57 = vpop.f32.mrb[14].mxu0  ;;  %v977_v58 = vmul.f32 %v961_v52, %v2101_v22  ;;  %v962_v59 = vmul.f32 %v946_v37, %v2108_v42  ;;  %v885_v60 = vadd.f32 %v2037_v19, %v611_v44  ;;  %v1627_v62 = vpop.eup %1626  ;;  %v960_v0 = vmul.f32 %v944_v21, %v2111_v43 }
 0x1b4   : > { %v614_v61 = vpop.f32.mrb[15].mxu0  ;;  %1638 = vtanh.f32 %v1004_v53  ;;  %v975_v54 = vmul.f32 %v959_v56, %v2104_v41  ;;  %v2142_v8 = vadd.f32 %v2048_v26, %v893_v2  ;;  %v896_v10 = vadd.f32 %v1440_v57, %v2043_v9  ;;  %v1629_v12 = vpop.eup %1628 }
 0x1b5   : > { %v993_v3 = vadd.f32 %v977_v58, %v2101_v22  ;;  %v978_v63 = vmul.f32 %v962_v59, %v2108_v42  ;;  %v2136_v18 = vadd.f32 %v2048_v26, %v885_v60  ;;  %v888_v20 = vadd.f32 %v2039_v23, %v614_v61 }
 0x1b6   : > { %v991_v19 = vadd.f32 %v975_v54, %v2104_v41  ;;  %v976_v24 = vmul.f32 %v960_v0, %v2111_v43  ;;  %v2146_v7 = vmul.f32 0.5, %v2064_v45  ;;  %v923_v23 = vmul.f32 0.5, %v2068_v49 }
 0x1b7   : > { %v1009_v1 = vmul.f32 0.7978846, %v993_v3  ;;  %v994_v25 = vadd.f32 %v978_v63, %v2108_v42  ;;  %v947_v27 = vmul.f32 0.044715, %v2136_v18  ;;  %v949_v29 = vmul.f32 0.044715, %v2142_v8 }
 0x1b8   : > { %v1007_v28 = vmul.f32 0.7978846, %v991_v19  ;;  %v992_v11 = vadd.f32 %v976_v24, %v2111_v43  ;;  %v2155_v45 = vadd.f32 %v2048_v26, %v888_v20  ;;  %v2159_v49 = vadd.f32 %v2048_v26, %v896_v10 }
 0x1b9   : > { %1640 = vtanh.f32 %v1009_v1  ;;  %v1010_v30 = vmul.f32 0.7978846, %v994_v25  ;;  %v963_v9 = vmul.f32 %v947_v27, %v2136_v18  ;;  %v1631_v31 = vpop.eup %1630  ;;  %v965_v35 = vmul.f32 %v949_v29, %v2142_v8 }
 0x1ba   : > { %1642 = vtanh.f32 %v1007_v28  ;;  %v1008_v32 = vmul.f32 0.7978846, %v992_v11  ;;  %v1633_v36 = vpop.eup %1632  ;;  %v926_v38 = vmul.f32 0.5, %v2077_v55  ;;  %v948_v40 = vmul.f32 0.044715, %v2155_v45 }
 0x1bb   : > { %1644 = vtanh.f32 %v1010_v30  ;;  %v979_v39 = vmul.f32 %v963_v9, %v2136_v18  ;;  %v1635_v15 = vpop.eup %1634  ;;  %v924_v4 = vmul.f32 0.5, %v2085_v16  ;;  %v981_v17 = vmul.f32 %v965_v35, %v2142_v8 }
 0x1bc   : > { %1646 = vtanh.f32 %v1008_v32  ;;  %v950_v46 = vmul.f32 0.044715, %v2159_v49  ;;  %v1637_v47 = vpop.eup %1636  ;;  %v964_v34 = vmul.f32 %v948_v40, %v2155_v45  ;;  %v1031_v50 = vadd.f32 1.0, %v1627_v62 }
 0x1bd   : > { %v995_v26 = vadd.f32 %v979_v39, %v2136_v18  ;;  %v1032_v55 = vadd.f32 1.0, %v1631_v31  ;;  %v997_v52 = vadd.f32 %v981_v17, %v2142_v8  ;;  %v1033_v44 = vadd.f32 1.0, %v1625_v48 }
 0x1be   : > { %v1639_v51 = vpop.eup %1638  ;;  %v966_v37 = vmul.f32 %v950_v46, %v2159_v49  ;;  %v1034_v53 = vadd.f32 1.0, %v1629_v12  ;;  %v980_v56 = vmul.f32 %v964_v34, %v2155_v45  ;;  %v1047_v21 = vmul.f32 %v1031_v50, %v2081_v13 }
 0x1bf   : > { %v1011_v16 = vmul.f32 0.7978846, %v995_v26  ;;  %v1048_v57 = vmul.f32 %v1032_v55, %v2119_v33  ;;  %v1013_v58 = vmul.f32 0.7978846, %v997_v52  ;;  %v1049_v61 = vmul.f32 %v1033_v44, %v2079_v5 }
 0x1c0   : > { %v982_v59 = vmul.f32 %v966_v37, %v2159_v49  ;;  %v1050_v48 = vmul.f32 %v1034_v53, %v2114_v6  ;;  %v996_v62 = vadd.f32 %v980_v56, %v2155_v45  ;;  %v1035_v13 = vadd.f32 1.0, %v1635_v15 }
 0x1c1   : > { %1648 = vtanh.f32 %v1011_v16  ;;  %v1477_v54 = vpack.c.bf16 %v1048_v57, %v1047_v21  ;;  %v1036_v2 = vadd.f32 1.0, %v1639_v51  ;;  %v929_v63 = vmul.f32 0.5, %v2101_v22 }
 0x1c2   : > { %1650 = vtanh.f32 %v1013_v58  ;;  %v998_v33 = vadd.f32 %v982_v59, %v2159_v49  ;;  %v1481_v0 = vpack.c.bf16 %v1050_v48, %v1049_v61  ;;  %v1012_v20 = vmul.f32 0.7978846, %v996_v62 }
 0x1c3   : > { %v1641_v3 = vpop.eup %1640  ;;  %1479 = vmatpush3.bf16.xpose.msk.msra.mxu0 %vm2177_vm5, %v1477_v54  ;;  %v1037_v5 = vadd.f32 1.0, %v1633_v36  ;;  %v1038_v19 = vadd.f32 1.0, %v1637_v47  ;;  %v1051_v10 = vmul.f32 %v1035_v13, %v923_v23  ;;  %v1052_v1 = vmul.f32 %v1036_v2, %v924_v4 }
 0x1c4   : > { %v1643_v6 = vpop.eup %1642  ;;  %v1014_v24 = vmul.f32 0.7978846, %v998_v33  ;;  %1480 = vmatprep.subr.bf16.mxu0 %v1721_v14  ;;  %v1041_v25 = vadd.f32 1.0, %v1641_v3  ;;  %1652 = vtanh.f32 %v1012_v20  ;;  %v930_v12 = vmul.f32 0.5, %v2108_v42 }
 0x1c5   : > { %v1645_v27 = vpop.eup %1644  ;;  %v1053_v28 = vmul.f32 %v1037_v5, %v2146_v7  ;;  %v1054_v11 = vmul.f32 %v1038_v19, %v926_v38  ;;  %v1039_v29 = vadd.f32 1.0, %v1643_v6  ;;  %v1485_v30 = vpack.c.bf16 %v1052_v1, %v1051_v10 }
 0x1c6   : > { %v1647_v22 = vpop.eup %1646  ;;  %1654 = vtanh.f32 %v1014_v24  ;;  %v1042_v9 = vadd.f32 1.0, %v1645_v27  ;;  %v927_v31 = vmul.f32 0.5, %v2104_v41  ;;  %v928_v32 = vmul.f32 0.5, %v2111_v43 }
 0x1c7   : > { %v1489_v35 = vpack.c.bf16 %v1054_v11, %v1053_v28  ;;  %v1040_v23 = vadd.f32 1.0, %v1647_v22  ;;  %v1057_v36 = vmul.f32 %v1041_v25, %v929_v63  ;;  %v931_v17 = vmul.f32 0.5, %v2136_v18 }
 0x1c8   : > { %v1058_v39 = vmul.f32 %v1042_v9, %v930_v12  ;;  %v1055_v40 = vmul.f32 %v1039_v29, %v927_v31  ;;  %v933_v43 = vmul.f32 0.5, %v2142_v8  ;;  %v932_v47 = vmul.f32 0.5, %v2155_v45  ;;  %v1063_v45 = vld [vmem:[%s2272_s4 + $0x1] sm:$0x1] }
 0x1c9   : > { %v1056_v15 = vmul.f32 %v1040_v23, %v928_v32  ;;  %v934_v34 = vmul.f32 0.5, %v2159_v49  ;;  %v1065_v49 = vstv %s1064_s30 }
 0x1ca   : > { %v1497_v4 = vpack.c.bf16 %v1058_v39, %v1057_v36 }
 0x1cb   : > { %v1649_v7 = vpop.eup %1648  ;;  %1483 = vmatpush3.bf16.xpose.msk.msra.mxu0 %vm2177_vm5, %v1481_v0  ;;  %v1493_v38 = vpack.c.bf16 %v1056_v15, %v1055_v40 }
 0x1cc   : > { %v1651_v42 = vpop.eup %1650  ;;  %1484 = vmatprep.subr.bf16.mxu0 %v1721_v14  ;;  %v1043_v41 = vadd.f32 1.0, %v1649_v7 }
 0x1cd   : > { %v1045_v46 = vadd.f32 1.0, %v1651_v42 }
 0x1ce   : > { %v1653_v26 = vpop.eup %1652  ;;  %v1059_v51 = vmul.f32 %v1043_v41, %v931_v17 }
 0x1cf   : > { %v1044_v55 = vadd.f32 1.0, %v1653_v26  ;;  %v1061_v37 = vmul.f32 %v1045_v46, %v933_v43 }
 0x1d0   : > { %v1655_v50 = vpop.eup %1654 }
 0x1d1   : > { %v1046_v52 = vadd.f32 1.0, %v1655_v50  ;;  %v1060_v44 = vmul.f32 %v1044_v55, %v932_v47 }
 0x1d3   : > { %1487 = vmatpush3.bf16.xpose.msk.msra.mxu0 %vm2177_vm5, %v1485_v30  ;;  %v1062_v18 = vmul.f32 %v1046_v52, %v934_v34  ;;  %v1501_v8 = vpack.c.bf16 %v1060_v44, %v1059_v51 }
 0x1d4   : > { %1488 = vmatprep.subr.bf16.mxu0 %v1721_v14 }
 0x1d5   : > { %v1505_v53 = vpack.c.bf16 %v1062_v18, %v1061_v37 }
 0x1db   : > { %1491 = vmatpush3.bf16.xpose.msk.msra.mxu0 %vm2177_vm5, %v1489_v35 }
 0x1dc   : > { %1492 = vmatprep.subr.bf16.mxu0 %v1721_v14 }
 0x1e3   : > { %1495 = vmatpush3.bf16.xpose.msk.msra.mxu0 %vm2177_vm5, %v1493_v38 }
 0x1e4   : > { %1496 = vmatprep.subr.bf16.mxu0 %v1721_v14 }
 0x1eb   : > { %1499 = vmatpush3.bf16.xpose.msk.msra.mxu0 %vm2177_vm5, %v1497_v4 }
 0x1ec   : > { %1500 = vmatprep.subr.bf16.mxu0 %v1721_v14 }
 0x1f3   : > { %1503 = vmatpush3.bf16.xpose.msk.msra.mxu0 %vm2177_vm5, %v1501_v8 }
 0x1f4   : > { %1504 = vmatprep.subr.bf16.mxu0 %v1721_v14 }
 0x1fb   : > { %1507 = vmatpush3.bf16.xpose.msk.msra.mxu0 %vm2177_vm5, %v1505_v53 }
 0x202   : > { %1474 = vmatmul.mubr.msk.f32.vlgmr.msra.gmra.mrb[16].mxu0 %vm1066_vm4, %v1063_v45 }
 0x2d5   : > { %v1184_v16 = vpop.f32.mrb[16].mxu0 }
 0x2d6   : > { %v1185_v56 = vadd.f32 %v1184_v16, %v1065_v49  ;;  %v1475_v21 = vpop.f32.mrb[17].mxu0 }
 0x2d8   : > { %1188 = vst [vmem:[%s263_s12] sm:$0x1] %v1185_v56 }
 0x2d9   : > { %1669 = shalt.err (!%p1666_p3)
}
 0x2da   : > { %s1670_s10 = scalar_lea.hbm %s2226_s17, 16  ;;  %s1674_s27 = scalar_lea.hbm %s2274_s6, 32 }
 0x2db   : > { %p1671_p4 = scmp.ne.s32.totalorder %s2226_s17, %s1670_s10  ;;  %p1675_p9 = scmp.lt.u32.totalorder %s2226_s17, %s2274_s6 }
 0x2dc   : > { %p1676_p10 = scmp.lt.u32.totalorder %s1674_s27, %s1670_s10  ;;  %p1678_p12 = scmp.lt.u32.totalorder %s1670_s10, %s2226_s17 }
 0x2dd   : > { %p1672_p7 = pnand %p1671_p4, %p1798_p5 }
 0x2de   : > { %p1677_p11 = por %p1676_p10, %p1675_p9 }
 0x2df   : > { %p1673_p8 = pneg %p1672_p7 }
 0x2e0   : > { %p1679_p13 = por %p1678_p12, %p1677_p11 }
 0x2e2   : > { %p1680_p0 = pnand %p1679_p13, %p1673_p8 }
 0x2e4   : > { %1683 = shalt.err (!%p1680_p0)
}
 0x2e5   : > { %1508 = dma.vmem_to_hbm [thread:$0]  (%p1798_p5), %s2228_s14, 16, %s2226_s17, %s1190_s18  }
 0x2e6 PF: > { %p1514_p1 = scmp.ge.s32.totalorder %s1718_s26, 2  ;;  %s1214_s11 = sand.u32 1, %s1706_s23  }
 0x2e7   : > { %s1215_s12 = scalar_lea.sflag [#allocation4], %s1214_s11 }
 0x2e8   : > { %p1511_p2 = pnand %p1514_p1, %p1802_p6 }
 0x2ea   : > { %1701 = dma.done.wait (!%p1511_p2), %s1215_s12, 16  }
 0x2eb   : > { %1703 = vsyncadd (!%p1511_p2), %s1215_s12, 4294967280  ;;  %p17_p3 = scmp.ge.s32.totalorder %s1786_s28, 4   ;;  %s2279_s23 = smov %s1710_s24 }
 0x2ec   : > { %s2280_s24 = smov %s1714_s25  ;;  %s2281_s25 = smov %s1796_s7 }
 0x2ed   : > { %s2282_s26 = smov %s1786_s28  ;;  %19 = sbr.rel (!%p17_p3) target bundleno = 5 (0x5), region = 82 }
 0x2f4   :  { %1219 = vsyncpa [#allocation4], 1 }
 0x2f5   :  { %1221 = vsyncpa [#allocation4 + $0x1], 1 }

</bundles_post_ra>
